<compile_context>
chip_gen: v7x
topology: tpu7x:2x2x1
jax: 0.10.0
libtpu: 0.0.40
codegen_flags: <defaults>
</compile_context>

<pallas_src>
import jax
import jax.numpy as jnp
import numpy as np
from jax.experimental import pallas as pl
from jax.experimental.pallas import tpu as pltpu


def encoder_kernel(x_ref, w1_ref, b1_ref, w2_ref, b2_ref, wfc_ref, bfc_ref, eps_ref,
                   z_ref, mu_ref, lv_ref, hflat_ref):
    # x: (1, 1, BB*L)  w1: (16, 3)  b1: (16, 1)  w2: (3, 32, 16)  b2: (32, 1)
    # wfc: (32*L, 2*latent)  bfc: (1, 2*latent)  eps/z/mu/lv: (BB, latent)
    BB, latent = z_ref.shape
    BL = x_ref.shape[-1]                  # BB * L   (batch rows packed along lanes)
    L = BL // BB

    # Masks zeroing the wrap-around element of each length-L batch segment.
    lane = jax.lax.broadcasted_iota(jnp.int32, (1, BL), 1)
    not_first = (lane % L) != 0           # l > 0
    not_last = (lane % L) != (L - 1)      # l < L - 1

    def shift_r(a):    # y[:, l] = a[:, l-1], 0 at l == 0     (tap k=0, padding=1)
        return jnp.where(not_first, pltpu.roll(a, 1, axis=1), 0.0)

    def shift_l(a):    # y[:, l] = a[:, l+1], 0 at l == L-1   (tap k=2, padding=1)
        return jnp.where(not_last, pltpu.roll(a, BL - 1, axis=1), 0.0)

    # Conv1d(1 -> 16, k=3, pad=1) + ReLU   (VPU broadcast mul-adds over BB*L lanes)
    x2 = x_ref[0]                                    # (1, BL)
    w1 = w1_ref[...]                                 # (16, 3)
    h1 = (w1[:, 0:1] * shift_r(x2)
          + w1[:, 1:2] * x2
          + w1[:, 2:3] * shift_l(x2)
          + b1_ref[...])                             # (16, BL)
    h1 = jnp.maximum(h1, 0.0)

    # Conv1d(16 -> 32, k=3, pad=1) + ReLU  (three (32,16)@(16,BL) MXU matmuls)
    h2 = (jnp.dot(w2_ref[0], shift_r(h1), preferred_element_type=jnp.float32)
          + jnp.dot(w2_ref[1], h1, preferred_element_type=jnp.float32)
          + jnp.dot(w2_ref[2], shift_l(h1), preferred_element_type=jnp.float32)
          + b2_ref[...])                             # (32, BL)
    h2 = jnp.maximum(h2, 0.0)

    # Channel-major flatten (== nn.Flatten on (BB, 32, L)), done in VMEM scratch:
    #   hflat[b, c*L + l] = h2[c, b*L + l]
    C2 = h2.shape[0]
    for b in range(BB):
        for c in range(C2):
            hflat_ref[b:b + 1, c * L:(c + 1) * L] = h2[c:c + 1, b * L:(b + 1) * L]

    # Fused fc_mu || fc_logvar: one lane-dense (BB, 32L) @ (32L, 2*latent) matmul.
    out = (jnp.dot(hflat_ref[...], wfc_ref[...], preferred_element_type=jnp.float32)
           + bfc_ref[...])                           # (BB, 2*latent)
    mu = out[:, :latent]
    lv = out[:, latent:]
    mu_ref[...] = mu
    lv_ref[...] = lv
    z_ref[...] = mu + eps_ref[...] * jnp.exp(0.5 * lv)     # reparameterize


def cnn_encoder_forward(x, params, eps):
    """x: (B, input_dim) f32 -> (z, mu, logvar), each (B, latent_dim)."""
    B, L = x.shape
    latent = params["b_mu"].shape[0]
    C1, C2 = params["w1"].shape[0], params["w2"].shape[0]   # 16, 32

    # Batch-block size: pack BB rows along lanes of every conv matmul.
    BB = B if B <= 8 else 8
    G = pl.cdiv(B, BB)
    Bp = G * BB
    if Bp != B:
        x = jnp.concatenate([x, jnp.zeros((Bp - B, L), x.dtype)], axis=0)
        eps = jnp.concatenate([eps, jnp.zeros((Bp - B, latent), eps.dtype)], axis=0)

    # Row-major reshape: lane index inside a block is b_in_block*L + l.
    x_r = x.reshape(G, 1, BB * L)

    w1 = params["w1"][:, 0, :]                       # (16, 3)   (single input channel)
    b1 = params["b1"][:, None]                       # (16, 1)
    w2 = jnp.transpose(params["w2"], (2, 0, 1))      # (3, 32, 16): w2[k] = W2[:, :, k]
    b2 = params["b2"][:, None]                       # (32, 1)
    # Concatenated FC weights/biases -> single 2*latent-wide (lane-dense) matmul.
    wfc = jnp.concatenate([params["w_mu"].T, params["w_logvar"].T], axis=1)  # (32L, 2*latent)
    bfc = jnp.concatenate([params["b_mu"], params["b_logvar"]])[None, :]     # (1, 2*latent)

    z, mu, lv = pl.pallas_call(
        encoder_kernel,
        out_shape=(
            jax.ShapeDtypeStruct((Bp, latent), jnp.float32),
            jax.ShapeDtypeStruct((Bp, latent), jnp.float32),
            jax.ShapeDtypeStruct((Bp, latent), jnp.float32),
        ),
        grid=(G,),
        in_specs=[
            pl.BlockSpec((1, 1, BB * L), lambda g: (g, 0, 0)),     # x block
            pl.BlockSpec((C1, 3), lambda g: (0, 0)),               # conv1 weight
            pl.BlockSpec((C1, 1), lambda g: (0, 0)),               # conv1 bias
            pl.BlockSpec((3, C2, C1), lambda g: (0, 0, 0)),        # conv2 weight
            pl.BlockSpec((C2, 1), lambda g: (0, 0)),               # conv2 bias
            pl.BlockSpec((C2 * L, 2 * latent), lambda g: (0, 0)),  # fc_mu||fc_logvar weight
            pl.BlockSpec((1, 2 * latent), lambda g: (0, 0)),       # fc bias
            pl.BlockSpec((BB, latent), lambda g: (g, 0)),          # eps
        ],
        out_specs=(
            pl.BlockSpec((BB, latent), lambda g: (g, 0)),
            pl.BlockSpec((BB, latent), lambda g: (g, 0)),
            pl.BlockSpec((BB, latent), lambda g: (g, 0)),
        ),
        scratch_shapes=[pltpu.VMEM((BB, C2 * L), jnp.float32)],
        compiler_params=pltpu.CompilerParams(
            dimension_semantics=("parallel",)),   # v7x: shard batch blocks over both TCs
    )(x_r, w1, b1, w2, b2, wfc, bfc, eps)

    return z[:B], mu[:B], lv[:B]


def reference_forward(x, params, eps):
    """Pure-JAX reference reproducing the PyTorch module semantics."""
    B, L = x.shape
    w1, b1 = params["w1"], params["b1"]              # (16, 1, 3), (16,)
    w2, b2 = params["w2"], params["b2"]              # (32, 16, 3), (32,)
    xin = x[:, None, :]                              # (B, 1, L)
    xp = jnp.pad(xin, ((0, 0), (0, 0), (1, 1)))
    h1 = sum(jnp.einsum("bil,oi->bol", xp[:, :, k:k + L], w1[:, :, k]) for k in range(3))
    h1 = jax.nn.relu(h1 + b1[None, :, None])
    h1p = jnp.pad(h1, ((0, 0), (0, 0), (1, 1)))
    h2 = sum(jnp.einsum("bil,oi->bol", h1p[:, :, k:k + L], w2[:, :, k]) for k in range(3))
    h2 = jax.nn.relu(h2 + b2[None, :, None])
    hf = h2.reshape(B, -1)
    mu = hf @ params["w_mu"].T + params["b_mu"]
    lv = hf @ params["w_logvar"].T + params["b_logvar"]
    z = mu + eps * jnp.exp(0.5 * lv)
    return z, mu, lv


if __name__ == "__main__":
    B, input_dim, latent_dim = 2, 64, 64
    key = jax.random.PRNGKey(0)
    ks = jax.random.split(key, 10)
    params = {
        "w1": 0.2 * jax.random.normal(ks[0], (16, 1, 3), jnp.float32),
        "b1": 0.1 * jax.random.normal(ks[1], (16,), jnp.float32),
        "w2": 0.1 * jax.random.normal(ks[2], (32, 16, 3), jnp.float32),
        "b2": 0.1 * jax.random.normal(ks[3], (32,), jnp.float32),
        "w_mu": 0.02 * jax.random.normal(ks[4], (latent_dim, 32 * input_dim), jnp.float32),
        "b_mu": 0.01 * jax.random.normal(ks[5], (latent_dim,), jnp.float32),
        "w_logvar": 0.02 * jax.random.normal(ks[6], (latent_dim, 32 * input_dim), jnp.float32),
        "b_logvar": 0.01 * jax.random.normal(ks[7], (latent_dim,), jnp.float32),
    }
    x = jax.random.normal(ks[8], (B, input_dim), jnp.float32)
    # Reparameterization noise (torch.randn equivalent), generated host-side for determinism.
    eps = jax.random.normal(ks[9], (B, latent_dim), jnp.float32)

    z, mu, logvar = jax.jit(cnn_encoder_forward)(x, params, eps)
    jax.block_until_ready((z, mu, logvar))

    z_r, mu_r, lv_r = reference_forward(x, params, eps)
    np.testing.assert_allclose(np.asarray(mu), np.asarray(mu_r), rtol=1e-3, atol=1e-3)
    np.testing.assert_allclose(np.asarray(logvar), np.asarray(lv_r), rtol=1e-3, atol=1e-3)
    np.testing.assert_allclose(np.asarray(z), np.asarray(z_r), rtol=1e-3, atol=1e-3)
    print("KERNEL_OK")
</pallas_src>

<mosaic_0001>
module attributes {stable_mosaic.version = 11 : i64} {
  func.func @encoder_kernel(%arg0: i32, %arg1: memref<1x1x128xf32, #tpu.memory_space<vmem>>, %arg2: memref<16x3xf32, #tpu.memory_space<vmem>>, %arg3: memref<16x1xf32, #tpu.memory_space<vmem>>, %arg4: memref<3x32x16xf32, #tpu.memory_space<vmem>>, %arg5: memref<32x1xf32, #tpu.memory_space<vmem>>, %arg6: memref<2048x128xf32, #tpu.memory_space<vmem>>, %arg7: memref<1x128xf32, #tpu.memory_space<vmem>>, %arg8: memref<2x64xf32, #tpu.memory_space<vmem>>, %arg9: memref<2x64xf32, #tpu.memory_space<vmem>>, %arg10: memref<2x64xf32, #tpu.memory_space<vmem>>, %arg11: memref<2x64xf32, #tpu.memory_space<vmem>>, %arg12: memref<2x2048xf32, #tpu.memory_space<vmem>>) attributes {dimension_semantics = [#tpu.dimension_semantics<parallel>], iteration_bounds = array<i64: 1>, scalar_prefetch = 0 : i64, scratch_operands = 1 : i64, tpu.core_type = #tpu.core_type<tc>, window_params = [{transform_indices = @transform_0, window_bounds = array<i64: 1, 1, 128>}, {pipeline_mode = #tpu.pipeline_mode<synchronous>, transform_indices = @transform_1, window_bounds = array<i64: 16, 3>}, {pipeline_mode = #tpu.pipeline_mode<synchronous>, transform_indices = @transform_2, window_bounds = array<i64: 16, 1>}, {pipeline_mode = #tpu.pipeline_mode<synchronous>, transform_indices = @transform_3, window_bounds = array<i64: 3, 32, 16>}, {pipeline_mode = #tpu.pipeline_mode<synchronous>, transform_indices = @transform_4, window_bounds = array<i64: 32, 1>}, {pipeline_mode = #tpu.pipeline_mode<synchronous>, transform_indices = @transform_5, window_bounds = array<i64: 2048, 128>}, {pipeline_mode = #tpu.pipeline_mode<synchronous>, transform_indices = @transform_6, window_bounds = array<i64: 1, 128>}, {transform_indices = @transform_7, window_bounds = array<i64: 2, 64>}, {transform_indices = @transform_8, window_bounds = array<i64: 2, 64>}, {transform_indices = @transform_9, window_bounds = array<i64: 2, 64>}, {transform_indices = @transform_10, window_bounds = array<i64: 2, 64>}]} {
    %0 = tpu.iota {dimensions = array<i32: 1>} : vector<1x128xi32>
    %c64_i32 = arith.constant 64 : i32
    %c0_i32 = arith.constant 0 : i32
    %1 = arith.cmpi eq, %c64_i32, %c0_i32 : i32
    %c1_i32 = arith.constant 1 : i32
    %2 = arith.select %1, %c1_i32, %c64_i32 : i32
    %3 = vector.broadcast %2 : i32 to vector<1x128xi32>
    %4 = arith.remsi %0, %3 : vector<1x128xi32>
    %c0_i32_0 = arith.constant 0 : i32
    %5 = vector.broadcast %c0_i32_0 : i32 to vector<1x128xi32>
    %6 = arith.cmpi ne, %4, %5 : vector<1x128xi32>
    %c0_i32_1 = arith.constant 0 : i32
    %7 = vector.broadcast %c0_i32_1 : i32 to vector<1x128xi32>
    %8 = arith.cmpi slt, %4, %7 : vector<1x128xi32>
    %c0_i32_2 = arith.constant 0 : i32
    %9 = arith.cmpi slt, %2, %c0_i32_2 : i32
    %10 = vector.broadcast %9 : i1 to vector<1x128xi1>
    %11 = vector.broadcast %10 : vector<1x128xi1> to vector<1x128xi1>
    %12 = arith.xori %8, %11 : vector<1x128xi1>
    %13 = arith.andi %12, %6 : vector<1x128xi1>
    %14 = vector.broadcast %2 : i32 to vector<1x128xi32>
    %15 = arith.addi %4, %14 : vector<1x128xi32>
    %16 = arith.select %13, %15, %4 : vector<1x128xi1>, vector<1x128xi32>
    %c0_i32_3 = arith.constant 0 : i32
    %17 = vector.broadcast %c0_i32_3 : i32 to vector<1x128xi32>
    %18 = arith.cmpi ne, %16, %17 : vector<1x128xi32>
    %c64_i32_4 = arith.constant 64 : i32
    %c0_i32_5 = arith.constant 0 : i32
    %19 = arith.cmpi eq, %c64_i32_4, %c0_i32_5 : i32
    %c1_i32_6 = arith.constant 1 : i32
    %20 = arith.select %19, %c1_i32_6, %c64_i32_4 : i32
    %21 = vector.broadcast %20 : i32 to vector<1x128xi32>
    %22 = arith.remsi %0, %21 : vector<1x128xi32>
    %c0_i32_7 = arith.constant 0 : i32
    %23 = vector.broadcast %c0_i32_7 : i32 to vector<1x128xi32>
    %24 = arith.cmpi ne, %22, %23 : vector<1x128xi32>
    %c0_i32_8 = arith.constant 0 : i32
    %25 = vector.broadcast %c0_i32_8 : i32 to vector<1x128xi32>
    %26 = arith.cmpi slt, %22, %25 : vector<1x128xi32>
    %c0_i32_9 = arith.constant 0 : i32
    %27 = arith.cmpi slt, %20, %c0_i32_9 : i32
    %28 = vector.broadcast %27 : i1 to vector<1x128xi1>
    %29 = vector.broadcast %28 : vector<1x128xi1> to vector<1x128xi1>
    %30 = arith.xori %26, %29 : vector<1x128xi1>
    %31 = arith.andi %30, %24 : vector<1x128xi1>
    %32 = vector.broadcast %20 : i32 to vector<1x128xi32>
    %33 = arith.addi %22, %32 : vector<1x128xi32>
    %34 = arith.select %31, %33, %22 : vector<1x128xi1>, vector<1x128xi32>
    %c63_i32 = arith.constant 63 : i32
    %35 = vector.broadcast %c63_i32 : i32 to vector<1x128xi32>
    %36 = arith.cmpi ne, %34, %35 : vector<1x128xi32>
    %c0 = arith.constant 0 : index
    %c0_10 = arith.constant 0 : index
    %c0_11 = arith.constant 0 : index
    %37 = vector.load %arg1[%c0, %c0_10, %c0_11] : memref<1x1x128xf32, #tpu.memory_space<vmem>>, vector<1x1x128xf32>
    %38 = vector.shape_cast %37 : vector<1x1x128xf32> to vector<1x128xf32>
    %c0_12 = arith.constant 0 : index
    %c0_13 = arith.constant 0 : index
    %39 = vector.load %arg2[%c0_12, %c0_13] : memref<16x3xf32, #tpu.memory_space<vmem>>, vector<16x3xf32>
    %40 = vector.extract_strided_slice %39 {offsets = [0, 0], sizes = [16, 1], strides = [1, 1]} : vector<16x3xf32> to vector<16x1xf32>
    %c1_i32_14 = arith.constant 1 : i32
    %41 = tpu.dynamic_rotate %38 by %c1_i32_14 dim 1 : vector<1x128xf32>, i32 -> vector<1x128xf32>
    %cst = arith.constant 0.000000e+00 : f32
    %42 = vector.broadcast %cst : f32 to vector<1x128xf32>
    %43 = arith.select %18, %41, %42 : vector<1x128xi1>, vector<1x128xf32>
    %44 = vector.broadcast %40 : vector<16x1xf32> to vector<16x128xf32>
    %45 = vector.broadcast %43 : vector<1x128xf32> to vector<16x128xf32>
    %46 = arith.mulf %44, %45 : vector<16x128xf32>
    %47 = vector.extract_strided_slice %39 {offsets = [0, 1], sizes = [16, 1], strides = [1, 1]} : vector<16x3xf32> to vector<16x1xf32>
    %48 = vector.broadcast %47 : vector<16x1xf32> to vector<16x128xf32>
    %49 = vector.broadcast %38 : vector<1x128xf32> to vector<16x128xf32>
    %50 = arith.mulf %48, %49 : vector<16x128xf32>
    %51 = arith.addf %46, %50 : vector<16x128xf32>
    %52 = vector.extract_strided_slice %39 {offsets = [0, 2], sizes = [16, 1], strides = [1, 1]} : vector<16x3xf32> to vector<16x1xf32>
    %c127_i32 = arith.constant 127 : i32
    %53 = tpu.dynamic_rotate %38 by %c127_i32 dim 1 : vector<1x128xf32>, i32 -> vector<1x128xf32>
    %cst_15 = arith.constant 0.000000e+00 : f32
    %54 = vector.broadcast %cst_15 : f32 to vector<1x128xf32>
    %55 = arith.select %36, %53, %54 : vector<1x128xi1>, vector<1x128xf32>
    %56 = vector.broadcast %52 : vector<16x1xf32> to vector<16x128xf32>
    %57 = vector.broadcast %55 : vector<1x128xf32> to vector<16x128xf32>
    %58 = arith.mulf %56, %57 : vector<16x128xf32>
    %59 = arith.addf %51, %58 : vector<16x128xf32>
    %c0_16 = arith.constant 0 : index
    %c0_17 = arith.constant 0 : index
    %60 = vector.load %arg3[%c0_16, %c0_17] : memref<16x1xf32, #tpu.memory_space<vmem>>, vector<16x1xf32>
    %61 = vector.broadcast %60 : vector<16x1xf32> to vector<16x128xf32>
    %62 = arith.addf %59, %61 : vector<16x128xf32>
    %cst_18 = arith.constant 0.000000e+00 : f32
    %63 = vector.broadcast %cst_18 : f32 to vector<16x128xf32>
    %64 = arith.maximumf %62, %63 : vector<16x128xf32>
    %c0_19 = arith.constant 0 : index
    %c0_20 = arith.constant 0 : index
    %c0_21 = arith.constant 0 : index
    %65 = vector.load %arg4[%c0_19, %c0_20, %c0_21] : memref<3x32x16xf32, #tpu.memory_space<vmem>>, vector<1x32x16xf32>
    %66 = vector.shape_cast %65 : vector<1x32x16xf32> to vector<32x16xf32>
    %c1_i32_22 = arith.constant 1 : i32
    %67 = tpu.dynamic_rotate %64 by %c1_i32_22 dim 1 : vector<16x128xf32>, i32 -> vector<16x128xf32>
    %cst_23 = arith.constant 0.000000e+00 : f32
    %68 = vector.shape_cast %18 : vector<1x128xi1> to vector<1x128xi1>
    %69 = vector.broadcast %68 : vector<1x128xi1> to vector<16x128xi1>
    %70 = vector.broadcast %cst_23 : f32 to vector<16x128xf32>
    %71 = arith.select %69, %67, %70 : vector<16x128xi1>, vector<16x128xf32>
    %cst_24 = arith.constant dense<0.000000e+00> : vector<32x128xf32>
    %72 = tpu.matmul %66, %71, %cst_24 {dimension_numbers = #tpu.dot_dimension_numbers<[1], [0], [0], [1], [0, 0, 1, 1], [], []>} : vector<32x16xf32>, vector<16x128xf32>, vector<32x128xf32> -> vector<32x128xf32>
    %c1 = arith.constant 1 : index
    %c0_25 = arith.constant 0 : index
    %c0_26 = arith.constant 0 : index
    %73 = vector.load %arg4[%c1, %c0_25, %c0_26] : memref<3x32x16xf32, #tpu.memory_space<vmem>>, vector<1x32x16xf32>
    %74 = vector.shape_cast %73 : vector<1x32x16xf32> to vector<32x16xf32>
    %cst_27 = arith.constant dense<0.000000e+00> : vector<32x128xf32>
    %75 = tpu.matmul %74, %64, %cst_27 {dimension_numbers = #tpu.dot_dimension_numbers<[1], [0], [0], [1], [0, 0, 1, 1], [], []>} : vector<32x16xf32>, vector<16x128xf32>, vector<32x128xf32> -> vector<32x128xf32>
    %76 = arith.addf %72, %75 : vector<32x128xf32>
    %c2 = arith.constant 2 : index
    %c0_28 = arith.constant 0 : index
    %c0_29 = arith.constant 0 : index
    %77 = vector.load %arg4[%c2, %c0_28, %c0_29] : memref<3x32x16xf32, #tpu.memory_space<vmem>>, vector<1x32x16xf32>
    %78 = vector.shape_cast %77 : vector<1x32x16xf32> to vector<32x16xf32>
    %c127_i32_30 = arith.constant 127 : i32
    %79 = tpu.dynamic_rotate %64 by %c127_i32_30 dim 1 : vector<16x128xf32>, i32 -> vector<16x128xf32>
    %cst_31 = arith.constant 0.000000e+00 : f32
    %80 = vector.shape_cast %36 : vector<1x128xi1> to vector<1x128xi1>
    %81 = vector.broadcast %80 : vector<1x128xi1> to vector<16x128xi1>
    %82 = vector.broadcast %cst_31 : f32 to vector<16x128xf32>
    %83 = arith.select %81, %79, %82 : vector<16x128xi1>, vector<16x128xf32>
    %cst_32 = arith.constant dense<0.000000e+00> : vector<32x128xf32>
    %84 = tpu.matmul %78, %83, %cst_32 {dimension_numbers = #tpu.dot_dimension_numbers<[1], [0], [0], [1], [0, 0, 1, 1], [], []>} : vector<32x16xf32>, vector<16x128xf32>, vector<32x128xf32> -> vector<32x128xf32>
    %85 = arith.addf %76, %84 : vector<32x128xf32>
    %c0_33 = arith.constant 0 : index
    %c0_34 = arith.constant 0 : index
    %86 = vector.load %arg5[%c0_33, %c0_34] : memref<32x1xf32, #tpu.memory_space<vmem>>, vector<32x1xf32>
    %87 = vector.broadcast %86 : vector<32x1xf32> to vector<32x128xf32>
    %88 = arith.addf %85, %87 : vector<32x128xf32>
    %cst_35 = arith.constant 0.000000e+00 : f32
    %89 = vector.broadcast %cst_35 : f32 to vector<32x128xf32>
    %90 = arith.maximumf %88, %89 : vector<32x128xf32>
    %91 = vector.extract_strided_slice %90 {offsets = [0, 0], sizes = [1, 64], strides = [1, 1]} : vector<32x128xf32> to vector<1x64xf32>
    %c0_36 = arith.constant 0 : index
    %c0_37 = arith.constant 0 : index
    %92 = vector.load %arg12[%c0_36, %c0_37] : memref<2x2048xf32, #tpu.memory_space<vmem>>, vector<1x64xf32>
    tpu.vector_store %arg12[%c0_36, %c0_37], %91 {strides = array<i32>} : memref<2x2048xf32, #tpu.memory_space<vmem>>, vector<1x64xf32>,
    %93 = vector.extract_strided_slice %90 {offsets = [1, 0], sizes = [1, 64], strides = [1, 1]} : vector<32x128xf32> to vector<1x64xf32>
    %c0_38 = arith.constant 0 : index
    %c64 = arith.constant 64 : index
    %94 = vector.load %arg12[%c0_38, %c64] : memref<2x2048xf32, #tpu.memory_space<vmem>>, vector<1x64xf32>
    tpu.vector_store %arg12[%c0_38, %c64], %93 {strides = array<i32>} : memref<2x2048xf32, #tpu.memory_space<vmem>>, vector<1x64xf32>,
    %95 = vector.extract_strided_slice %90 {offsets = [2, 0], sizes = [1, 64], strides = [1, 1]} : vector<32x128xf32> to vector<1x64xf32>
    %c0_39 = arith.constant 0 : index
    %c128 = arith.constant 128 : index
    %96 = vector.load %arg12[%c0_39, %c128] : memref<2x2048xf32, #tpu.memory_space<vmem>>, vector<1x64xf32>
    tpu.vector_store %arg12[%c0_39, %c128], %95 {strides = array<i32>} : memref<2x2048xf32, #tpu.memory_space<vmem>>, vector<1x64xf32>,
    %97 = vector.extract_strided_slice %90 {offsets = [3, 0], sizes = [1, 64], strides = [1, 1]} : vector<32x128xf32> to vector<1x64xf32>
    %c0_40 = arith.constant 0 : index
    %c192 = arith.constant 192 : index
    %98 = vector.load %arg12[%c0_40, %c192] : memref<2x2048xf32, #tpu.memory_space<vmem>>, vector<1x64xf32>
    tpu.vector_store %arg12[%c0_40, %c192], %97 {strides = array<i32>} : memref<2x2048xf32, #tpu.memory_space<vmem>>, vector<1x64xf32>,
    %99 = vector.extract_strided_slice %90 {offsets = [4, 0], sizes = [1, 64], strides = [1, 1]} : vector<32x128xf32> to vector<1x64xf32>
    %c0_41 = arith.constant 0 : index
    %c256 = arith.constant 256 : index
    %100 = vector.load %arg12[%c0_41, %c256] : memref<2x2048xf32, #tpu.memory_space<vmem>>, vector<1x64xf32>
    tpu.vector_store %arg12[%c0_41, %c256], %99 {strides = array<i32>} : memref<2x2048xf32, #tpu.memory_space<vmem>>, vector<1x64xf32>,
    %101 = vector.extract_strided_slice %90 {offsets = [5, 0], sizes = [1, 64], strides = [1, 1]} : vector<32x128xf32> to vector<1x64xf32>
    %c0_42 = arith.constant 0 : index
    %c320 = arith.constant 320 : index
    %102 = vector.load %arg12[%c0_42, %c320] : memref<2x2048xf32, #tpu.memory_space<vmem>>, vector<1x64xf32>
    tpu.vector_store %arg12[%c0_42, %c320], %101 {strides = array<i32>} : memref<2x2048xf32, #tpu.memory_space<vmem>>, vector<1x64xf32>,
    %103 = vector.extract_strided_slice %90 {offsets = [6, 0], sizes = [1, 64], strides = [1, 1]} : vector<32x128xf32> to vector<1x64xf32>
    %c0_43 = arith.constant 0 : index
    %c384 = arith.constant 384 : index
    %104 = vector.load %arg12[%c0_43, %c384] : memref<2x2048xf32, #tpu.memory_space<vmem>>, vector<1x64xf32>
    tpu.vector_store %arg12[%c0_43, %c384], %103 {strides = array<i32>} : memref<2x2048xf32, #tpu.memory_space<vmem>>, vector<1x64xf32>,
    %105 = vector.extract_strided_slice %90 {offsets = [7, 0], sizes = [1, 64], strides = [1, 1]} : vector<32x128xf32> to vector<1x64xf32>
    %c0_44 = arith.constant 0 : index
    %c448 = arith.constant 448 : index
    %106 = vector.load %arg12[%c0_44, %c448] : memref<2x2048xf32, #tpu.memory_space<vmem>>, vector<1x64xf32>
    tpu.vector_store %arg12[%c0_44, %c448], %105 {strides = array<i32>} : memref<2x2048xf32, #tpu.memory_space<vmem>>, vector<1x64xf32>,
    %107 = vector.extract_strided_slice %90 {offsets = [8, 0], sizes = [1, 64], strides = [1, 1]} : vector<32x128xf32> to vector<1x64xf32>
    %c0_45 = arith.constant 0 : index
    %c512 = arith.constant 512 : index
    %108 = vector.load %arg12[%c0_45, %c512] : memref<2x2048xf32, #tpu.memory_space<vmem>>, vector<1x64xf32>
    tpu.vector_store %arg12[%c0_45, %c512], %107 {strides = array<i32>} : memref<2x2048xf32, #tpu.memory_space<vmem>>, vector<1x64xf32>,
    %109 = vector.extract_strided_slice %90 {offsets = [9, 0], sizes = [1, 64], strides = [1, 1]} : vector<32x128xf32> to vector<1x64xf32>
    %c0_46 = arith.constant 0 : index
    %c576 = arith.constant 576 : index
    %110 = vector.load %arg12[%c0_46, %c576] : memref<2x2048xf32, #tpu.memory_space<vmem>>, vector<1x64xf32>
    tpu.vector_store %arg12[%c0_46, %c576], %109 {strides = array<i32>} : memref<2x2048xf32, #tpu.memory_space<vmem>>, vector<1x64xf32>,
    %111 = vector.extract_strided_slice %90 {offsets = [10, 0], sizes = [1, 64], strides = [1, 1]} : vector<32x128xf32> to vector<1x64xf32>
    %c0_47 = arith.constant 0 : index
    %c640 = arith.constant 640 : index
    %112 = vector.load %arg12[%c0_47, %c640] : memref<2x2048xf32, #tpu.memory_space<vmem>>, vector<1x64xf32>
    tpu.vector_store %arg12[%c0_47, %c640], %111 {strides = array<i32>} : memref<2x2048xf32, #tpu.memory_space<vmem>>, vector<1x64xf32>,
    %113 = vector.extract_strided_slice %90 {offsets = [11, 0], sizes = [1, 64], strides = [1, 1]} : vector<32x128xf32> to vector<1x64xf32>
    %c0_48 = arith.constant 0 : index
    %c704 = arith.constant 704 : index
    %114 = vector.load %arg12[%c0_48, %c704] : memref<2x2048xf32, #tpu.memory_space<vmem>>, vector<1x64xf32>
    tpu.vector_store %arg12[%c0_48, %c704], %113 {strides = array<i32>} : memref<2x2048xf32, #tpu.memory_space<vmem>>, vector<1x64xf32>,
    %115 = vector.extract_strided_slice %90 {offsets = [12, 0], sizes = [1, 64], strides = [1, 1]} : vector<32x128xf32> to vector<1x64xf32>
    %c0_49 = arith.constant 0 : index
    %c768 = arith.constant 768 : index
    %116 = vector.load %arg12[%c0_49, %c768] : memref<2x2048xf32, #tpu.memory_space<vmem>>, vector<1x64xf32>
    tpu.vector_store %arg12[%c0_49, %c768], %115 {strides = array<i32>} : memref<2x2048xf32, #tpu.memory_space<vmem>>, vector<1x64xf32>,
    %117 = vector.extract_strided_slice %90 {offsets = [13, 0], sizes = [1, 64], strides = [1, 1]} : vector<32x128xf32> to vector<1x64xf32>
    %c0_50 = arith.constant 0 : index
    %c832 = arith.constant 832 : index
    %118 = vector.load %arg12[%c0_50, %c832] : memref<2x2048xf32, #tpu.memory_space<vmem>>, vector<1x64xf32>
    tpu.vector_store %arg12[%c0_50, %c832], %117 {strides = array<i32>} : memref<2x2048xf32, #tpu.memory_space<vmem>>, vector<1x64xf32>,
    %119 = vector.extract_strided_slice %90 {offsets = [14, 0], sizes = [1, 64], strides = [1, 1]} : vector<32x128xf32> to vector<1x64xf32>
    %c0_51 = arith.constant 0 : index
    %c896 = arith.constant 896 : index
    %120 = vector.load %arg12[%c0_51, %c896] : memref<2x2048xf32, #tpu.memory_space<vmem>>, vector<1x64xf32>
    tpu.vector_store %arg12[%c0_51, %c896], %119 {strides = array<i32>} : memref<2x2048xf32, #tpu.memory_space<vmem>>, vector<1x64xf32>,
    %121 = vector.extract_strided_slice %90 {offsets = [15, 0], sizes = [1, 64], strides = [1, 1]} : vector<32x128xf32> to vector<1x64xf32>
    %c0_52 = arith.constant 0 : index
    %c960 = arith.constant 960 : index
    %122 = vector.load %arg12[%c0_52, %c960] : memref<2x2048xf32, #tpu.memory_space<vmem>>, vector<1x64xf32>
    tpu.vector_store %arg12[%c0_52, %c960], %121 {strides = array<i32>} : memref<2x2048xf32, #tpu.memory_space<vmem>>, vector<1x64xf32>,
    %123 = vector.extract_strided_slice %90 {offsets = [16, 0], sizes = [1, 64], strides = [1, 1]} : vector<32x128xf32> to vector<1x64xf32>
    %c0_53 = arith.constant 0 : index
    %c1024 = arith.constant 1024 : index
    %124 = vector.load %arg12[%c0_53, %c1024] : memref<2x2048xf32, #tpu.memory_space<vmem>>, vector<1x64xf32>
    tpu.vector_store %arg12[%c0_53, %c1024], %123 {strides = array<i32>} : memref<2x2048xf32, #tpu.memory_space<vmem>>, vector<1x64xf32>,
    %125 = vector.extract_strided_slice %90 {offsets = [17, 0], sizes = [1, 64], strides = [1, 1]} : vector<32x128xf32> to vector<1x64xf32>
    %c0_54 = arith.constant 0 : index
    %c1088 = arith.constant 1088 : index
    %126 = vector.load %arg12[%c0_54, %c1088] : memref<2x2048xf32, #tpu.memory_space<vmem>>, vector<1x64xf32>
    tpu.vector_store %arg12[%c0_54, %c1088], %125 {strides = array<i32>} : memref<2x2048xf32, #tpu.memory_space<vmem>>, vector<1x64xf32>,
    %127 = vector.extract_strided_slice %90 {offsets = [18, 0], sizes = [1, 64], strides = [1, 1]} : vector<32x128xf32> to vector<1x64xf32>
    %c0_55 = arith.constant 0 : index
    %c1152 = arith.constant 1152 : index
    %128 = vector.load %arg12[%c0_55, %c1152] : memref<2x2048xf32, #tpu.memory_space<vmem>>, vector<1x64xf32>
    tpu.vector_store %arg12[%c0_55, %c1152], %127 {strides = array<i32>} : memref<2x2048xf32, #tpu.memory_space<vmem>>, vector<1x64xf32>,
    %129 = vector.extract_strided_slice %90 {offsets = [19, 0], sizes = [1, 64], strides = [1, 1]} : vector<32x128xf32> to vector<1x64xf32>
    %c0_56 = arith.constant 0 : index
    %c1216 = arith.constant 1216 : index
    %130 = vector.load %arg12[%c0_56, %c1216] : memref<2x2048xf32, #tpu.memory_space<vmem>>, vector<1x64xf32>
    tpu.vector_store %arg12[%c0_56, %c1216], %129 {strides = array<i32>} : memref<2x2048xf32, #tpu.memory_space<vmem>>, vector<1x64xf32>,
    %131 = vector.extract_strided_slice %90 {offsets = [20, 0], sizes = [1, 64], strides = [1, 1]} : vector<32x128xf32> to vector<1x64xf32>
    %c0_57 = arith.constant 0 : index
    %c1280 = arith.constant 1280 : index
    %132 = vector.load %arg12[%c0_57, %c1280] : memref<2x2048xf32, #tpu.memory_space<vmem>>, vector<1x64xf32>
    tpu.vector_store %arg12[%c0_57, %c1280], %131 {strides = array<i32>} : memref<2x2048xf32, #tpu.memory_space<vmem>>, vector<1x64xf32>,
    %133 = vector.extract_strided_slice %90 {offsets = [21, 0], sizes = [1, 64], strides = [1, 1]} : vector<32x128xf32> to vector<1x64xf32>
    %c0_58 = arith.constant 0 : index
    %c1344 = arith.constant 1344 : index
    %134 = vector.load %arg12[%c0_58, %c1344] : memref<2x2048xf32, #tpu.memory_space<vmem>>, vector<1x64xf32>
    tpu.vector_store %arg12[%c0_58, %c1344], %133 {strides = array<i32>} : memref<2x2048xf32, #tpu.memory_space<vmem>>, vector<1x64xf32>,
    %135 = vector.extract_strided_slice %90 {offsets = [22, 0], sizes = [1, 64], strides = [1, 1]} : vector<32x128xf32> to vector<1x64xf32>
    %c0_59 = arith.constant 0 : index
    %c1408 = arith.constant 1408 : index
    %136 = vector.load %arg12[%c0_59, %c1408] : memref<2x2048xf32, #tpu.memory_space<vmem>>, vector<1x64xf32>
    tpu.vector_store %arg12[%c0_59, %c1408], %135 {strides = array<i32>} : memref<2x2048xf32, #tpu.memory_space<vmem>>, vector<1x64xf32>,
    %137 = vector.extract_strided_slice %90 {offsets = [23, 0], sizes = [1, 64], strides = [1, 1]} : vector<32x128xf32> to vector<1x64xf32>
    %c0_60 = arith.constant 0 : index
    %c1472 = arith.constant 1472 : index
    %138 = vector.load %arg12[%c0_60, %c1472] : memref<2x2048xf32, #tpu.memory_space<vmem>>, vector<1x64xf32>
    tpu.vector_store %arg12[%c0_60, %c1472], %137 {strides = array<i32>} : memref<2x2048xf32, #tpu.memory_space<vmem>>, vector<1x64xf32>,
    %139 = vector.extract_strided_slice %90 {offsets = [24, 0], sizes = [1, 64], strides = [1, 1]} : vector<32x128xf32> to vector<1x64xf32>
    %c0_61 = arith.constant 0 : index
    %c1536 = arith.constant 1536 : index
    %140 = vector.load %arg12[%c0_61, %c1536] : memref<2x2048xf32, #tpu.memory_space<vmem>>, vector<1x64xf32>
    tpu.vector_store %arg12[%c0_61, %c1536], %139 {strides = array<i32>} : memref<2x2048xf32, #tpu.memory_space<vmem>>, vector<1x64xf32>,
    %141 = vector.extract_strided_slice %90 {offsets = [25, 0], sizes = [1, 64], strides = [1, 1]} : vector<32x128xf32> to vector<1x64xf32>
    %c0_62 = arith.constant 0 : index
    %c1600 = arith.constant 1600 : index
    %142 = vector.load %arg12[%c0_62, %c1600] : memref<2x2048xf32, #tpu.memory_space<vmem>>, vector<1x64xf32>
    tpu.vector_store %arg12[%c0_62, %c1600], %141 {strides = array<i32>} : memref<2x2048xf32, #tpu.memory_space<vmem>>, vector<1x64xf32>,
    %143 = vector.extract_strided_slice %90 {offsets = [26, 0], sizes = [1, 64], strides = [1, 1]} : vector<32x128xf32> to vector<1x64xf32>
    %c0_63 = arith.constant 0 : index
    %c1664 = arith.constant 1664 : index
    %144 = vector.load %arg12[%c0_63, %c1664] : memref<2x2048xf32, #tpu.memory_space<vmem>>, vector<1x64xf32>
    tpu.vector_store %arg12[%c0_63, %c1664], %143 {strides = array<i32>} : memref<2x2048xf32, #tpu.memory_space<vmem>>, vector<1x64xf32>,
    %145 = vector.extract_strided_slice %90 {offsets = [27, 0], sizes = [1, 64], strides = [1, 1]} : vector<32x128xf32> to vector<1x64xf32>
    %c0_64 = arith.constant 0 : index
    %c1728 = arith.constant 1728 : index
    %146 = vector.load %arg12[%c0_64, %c1728] : memref<2x2048xf32, #tpu.memory_space<vmem>>, vector<1x64xf32>
    tpu.vector_store %arg12[%c0_64, %c1728], %145 {strides = array<i32>} : memref<2x2048xf32, #tpu.memory_space<vmem>>, vector<1x64xf32>,
    %147 = vector.extract_strided_slice %90 {offsets = [28, 0], sizes = [1, 64], strides = [1, 1]} : vector<32x128xf32> to vector<1x64xf32>
    %c0_65 = arith.constant 0 : index
    %c1792 = arith.constant 1792 : index
    %148 = vector.load %arg12[%c0_65, %c1792] : memref<2x2048xf32, #tpu.memory_space<vmem>>, vector<1x64xf32>
    tpu.vector_store %arg12[%c0_65, %c1792], %147 {strides = array<i32>} : memref<2x2048xf32, #tpu.memory_space<vmem>>, vector<1x64xf32>,
    %149 = vector.extract_strided_slice %90 {offsets = [29, 0], sizes = [1, 64], strides = [1, 1]} : vector<32x128xf32> to vector<1x64xf32>
    %c0_66 = arith.constant 0 : index
    %c1856 = arith.constant 1856 : index
    %150 = vector.load %arg12[%c0_66, %c1856] : memref<2x2048xf32, #tpu.memory_space<vmem>>, vector<1x64xf32>
    tpu.vector_store %arg12[%c0_66, %c1856], %149 {strides = array<i32>} : memref<2x2048xf32, #tpu.memory_space<vmem>>, vector<1x64xf32>,
    %151 = vector.extract_strided_slice %90 {offsets = [30, 0], sizes = [1, 64], strides = [1, 1]} : vector<32x128xf32> to vector<1x64xf32>
    %c0_67 = arith.constant 0 : index
    %c1920 = arith.constant 1920 : index
    %152 = vector.load %arg12[%c0_67, %c1920] : memref<2x2048xf32, #tpu.memory_space<vmem>>, vector<1x64xf32>
    tpu.vector_store %arg12[%c0_67, %c1920], %151 {strides = array<i32>} : memref<2x2048xf32, #tpu.memory_space<vmem>>, vector<1x64xf32>,
    %153 = vector.extract_strided_slice %90 {offsets = [31, 0], sizes = [1, 64], strides = [1, 1]} : vector<32x128xf32> to vector<1x64xf32>
    %c0_68 = arith.constant 0 : index
    %c1984 = arith.constant 1984 : index
    %154 = vector.load %arg12[%c0_68, %c1984] : memref<2x2048xf32, #tpu.memory_space<vmem>>, vector<1x64xf32>
    tpu.vector_store %arg12[%c0_68, %c1984], %153 {strides = array<i32>} : memref<2x2048xf32, #tpu.memory_space<vmem>>, vector<1x64xf32>,
    %155 = vector.extract_strided_slice %90 {offsets = [0, 64], sizes = [1, 64], strides = [1, 1]} : vector<32x128xf32> to vector<1x64xf32>
    %c1_69 = arith.constant 1 : index
    %c0_70 = arith.constant 0 : index
    %156 = vector.load %arg12[%c1_69, %c0_70] : memref<2x2048xf32, #tpu.memory_space<vmem>>, vector<1x64xf32>
    tpu.vector_store %arg12[%c1_69, %c0_70], %155 {strides = array<i32>} : memref<2x2048xf32, #tpu.memory_space<vmem>>, vector<1x64xf32>,
    %157 = vector.extract_strided_slice %90 {offsets = [1, 64], sizes = [1, 64], strides = [1, 1]} : vector<32x128xf32> to vector<1x64xf32>
    %c1_71 = arith.constant 1 : index
    %c64_72 = arith.constant 64 : index
    %158 = vector.load %arg12[%c1_71, %c64_72] : memref<2x2048xf32, #tpu.memory_space<vmem>>, vector<1x64xf32>
    tpu.vector_store %arg12[%c1_71, %c64_72], %157 {strides = array<i32>} : memref<2x2048xf32, #tpu.memory_space<vmem>>, vector<1x64xf32>,
    %159 = vector.extract_strided_slice %90 {offsets = [2, 64], sizes = [1, 64], strides = [1, 1]} : vector<32x128xf32> to vector<1x64xf32>
    %c1_73 = arith.constant 1 : index
    %c128_74 = arith.constant 128 : index
    %160 = vector.load %arg12[%c1_73, %c128_74] : memref<2x2048xf32, #tpu.memory_space<vmem>>, vector<1x64xf32>
    tpu.vector_store %arg12[%c1_73, %c128_74], %159 {strides = array<i32>} : memref<2x2048xf32, #tpu.memory_space<vmem>>, vector<1x64xf32>,
    %161 = vector.extract_strided_slice %90 {offsets = [3, 64], sizes = [1, 64], strides = [1, 1]} : vector<32x128xf32> to vector<1x64xf32>
    %c1_75 = arith.constant 1 : index
    %c192_76 = arith.constant 192 : index
    %162 = vector.load %arg12[%c1_75, %c192_76] : memref<2x2048xf32, #tpu.memory_space<vmem>>, vector<1x64xf32>
    tpu.vector_store %arg12[%c1_75, %c192_76], %161 {strides = array<i32>} : memref<2x2048xf32, #tpu.memory_space<vmem>>, vector<1x64xf32>,
    %163 = vector.extract_strided_slice %90 {offsets = [4, 64], sizes = [1, 64], strides = [1, 1]} : vector<32x128xf32> to vector<1x64xf32>
    %c1_77 = arith.constant 1 : index
    %c256_78 = arith.constant 256 : index
    %164 = vector.load %arg12[%c1_77, %c256_78] : memref<2x2048xf32, #tpu.memory_space<vmem>>, vector<1x64xf32>
    tpu.vector_store %arg12[%c1_77, %c256_78], %163 {strides = array<i32>} : memref<2x2048xf32, #tpu.memory_space<vmem>>, vector<1x64xf32>,
    %165 = vector.extract_strided_slice %90 {offsets = [5, 64], sizes = [1, 64], strides = [1, 1]} : vector<32x128xf32> to vector<1x64xf32>
    %c1_79 = arith.constant 1 : index
    %c320_80 = arith.constant 320 : index
    %166 = vector.load %arg12[%c1_79, %c320_80] : memref<2x2048xf32, #tpu.memory_space<vmem>>, vector<1x64xf32>
    tpu.vector_store %arg12[%c1_79, %c320_80], %165 {strides = array<i32>} : memref<2x2048xf32, #tpu.memory_space<vmem>>, vector<1x64xf32>,
    %167 = vector.extract_strided_slice %90 {offsets = [6, 64], sizes = [1, 64], strides = [1, 1]} : vector<32x128xf32> to vector<1x64xf32>
    %c1_81 = arith.constant 1 : index
    %c384_82 = arith.constant 384 : index
    %168 = vector.load %arg12[%c1_81, %c384_82] : memref<2x2048xf32, #tpu.memory_space<vmem>>, vector<1x64xf32>
    tpu.vector_store %arg12[%c1_81, %c384_82], %167 {strides = array<i32>} : memref<2x2048xf32, #tpu.memory_space<vmem>>, vector<1x64xf32>,
    %169 = vector.extract_strided_slice %90 {offsets = [7, 64], sizes = [1, 64], strides = [1, 1]} : vector<32x128xf32> to vector<1x64xf32>
    %c1_83 = arith.constant 1 : index
    %c448_84 = arith.constant 448 : index
    %170 = vector.load %arg12[%c1_83, %c448_84] : memref<2x2048xf32, #tpu.memory_space<vmem>>, vector<1x64xf32>
    tpu.vector_store %arg12[%c1_83, %c448_84], %169 {strides = array<i32>} : memref<2x2048xf32, #tpu.memory_space<vmem>>, vector<1x64xf32>,
    %171 = vector.extract_strided_slice %90 {offsets = [8, 64], sizes = [1, 64], strides = [1, 1]} : vector<32x128xf32> to vector<1x64xf32>
    %c1_85 = arith.constant 1 : index
    %c512_86 = arith.constant 512 : index
    %172 = vector.load %arg12[%c1_85, %c512_86] : memref<2x2048xf32, #tpu.memory_space<vmem>>, vector<1x64xf32>
    tpu.vector_store %arg12[%c1_85, %c512_86], %171 {strides = array<i32>} : memref<2x2048xf32, #tpu.memory_space<vmem>>, vector<1x64xf32>,
    %173 = vector.extract_strided_slice %90 {offsets = [9, 64], sizes = [1, 64], strides = [1, 1]} : vector<32x128xf32> to vector<1x64xf32>
    %c1_87 = arith.constant 1 : index
    %c576_88 = arith.constant 576 : index
    %174 = vector.load %arg12[%c1_87, %c576_88] : memref<2x2048xf32, #tpu.memory_space<vmem>>, vector<1x64xf32>
    tpu.vector_store %arg12[%c1_87, %c576_88], %173 {strides = array<i32>} : memref<2x2048xf32, #tpu.memory_space<vmem>>, vector<1x64xf32>,
    %175 = vector.extract_strided_slice %90 {offsets = [10, 64], sizes = [1, 64], strides = [1, 1]} : vector<32x128xf32> to vector<1x64xf32>
    %c1_89 = arith.constant 1 : index
    %c640_90 = arith.constant 640 : index
    %176 = vector.load %arg12[%c1_89, %c640_90] : memref<2x2048xf32, #tpu.memory_space<vmem>>, vector<1x64xf32>
    tpu.vector_store %arg12[%c1_89, %c640_90], %175 {strides = array<i32>} : memref<2x2048xf32, #tpu.memory_space<vmem>>, vector<1x64xf32>,
    %177 = vector.extract_strided_slice %90 {offsets = [11, 64], sizes = [1, 64], strides = [1, 1]} : vector<32x128xf32> to vector<1x64xf32>
    %c1_91 = arith.constant 1 : index
    %c704_92 = arith.constant 704 : index
    %178 = vector.load %arg12[%c1_91, %c704_92] : memref<2x2048xf32, #tpu.memory_space<vmem>>, vector<1x64xf32>
    tpu.vector_store %arg12[%c1_91, %c704_92], %177 {strides = array<i32>} : memref<2x2048xf32, #tpu.memory_space<vmem>>, vector<1x64xf32>,
    %179 = vector.extract_strided_slice %90 {offsets = [12, 64], sizes = [1, 64], strides = [1, 1]} : vector<32x128xf32> to vector<1x64xf32>
    %c1_93 = arith.constant 1 : index
    %c768_94 = arith.constant 768 : index
    %180 = vector.load %arg12[%c1_93, %c768_94] : memref<2x2048xf32, #tpu.memory_space<vmem>>, vector<1x64xf32>
    tpu.vector_store %arg12[%c1_93, %c768_94], %179 {strides = array<i32>} : memref<2x2048xf32, #tpu.memory_space<vmem>>, vector<1x64xf32>,
    %181 = vector.extract_strided_slice %90 {offsets = [13, 64], sizes = [1, 64], strides = [1, 1]} : vector<32x128xf32> to vector<1x64xf32>
    %c1_95 = arith.constant 1 : index
    %c832_96 = arith.constant 832 : index
    %182 = vector.load %arg12[%c1_95, %c832_96] : memref<2x2048xf32, #tpu.memory_space<vmem>>, vector<1x64xf32>
    tpu.vector_store %arg12[%c1_95, %c832_96], %181 {strides = array<i32>} : memref<2x2048xf32, #tpu.memory_space<vmem>>, vector<1x64xf32>,
    %183 = vector.extract_strided_slice %90 {offsets = [14, 64], sizes = [1, 64], strides = [1, 1]} : vector<32x128xf32> to vector<1x64xf32>
    %c1_97 = arith.constant 1 : index
    %c896_98 = arith.constant 896 : index
    %184 = vector.load %arg12[%c1_97, %c896_98] : memref<2x2048xf32, #tpu.memory_space<vmem>>, vector<1x64xf32>
    tpu.vector_store %arg12[%c1_97, %c896_98], %183 {strides = array<i32>} : memref<2x2048xf32, #tpu.memory_space<vmem>>, vector<1x64xf32>,
    %185 = vector.extract_strided_slice %90 {offsets = [15, 64], sizes = [1, 64], strides = [1, 1]} : vector<32x128xf32> to vector<1x64xf32>
    %c1_99 = arith.constant 1 : index
    %c960_100 = arith.constant 960 : index
    %186 = vector.load %arg12[%c1_99, %c960_100] : memref<2x2048xf32, #tpu.memory_space<vmem>>, vector<1x64xf32>
    tpu.vector_store %arg12[%c1_99, %c960_100], %185 {strides = array<i32>} : memref<2x2048xf32, #tpu.memory_space<vmem>>, vector<1x64xf32>,
    %187 = vector.extract_strided_slice %90 {offsets = [16, 64], sizes = [1, 64], strides = [1, 1]} : vector<32x128xf32> to vector<1x64xf32>
    %c1_101 = arith.constant 1 : index
    %c1024_102 = arith.constant 1024 : index
    %188 = vector.load %arg12[%c1_101, %c1024_102] : memref<2x2048xf32, #tpu.memory_space<vmem>>, vector<1x64xf32>
    tpu.vector_store %arg12[%c1_101, %c1024_102], %187 {strides = array<i32>} : memref<2x2048xf32, #tpu.memory_space<vmem>>, vector<1x64xf32>,
    %189 = vector.extract_strided_slice %90 {offsets = [17, 64], sizes = [1, 64], strides = [1, 1]} : vector<32x128xf32> to vector<1x64xf32>
    %c1_103 = arith.constant 1 : index
    %c1088_104 = arith.constant 1088 : index
    %190 = vector.load %arg12[%c1_103, %c1088_104] : memref<2x2048xf32, #tpu.memory_space<vmem>>, vector<1x64xf32>
    tpu.vector_store %arg12[%c1_103, %c1088_104], %189 {strides = array<i32>} : memref<2x2048xf32, #tpu.memory_space<vmem>>, vector<1x64xf32>,
    %191 = vector.extract_strided_slice %90 {offsets = [18, 64], sizes = [1, 64], strides = [1, 1]} : vector<32x128xf32> to vector<1x64xf32>
    %c1_105 = arith.constant 1 : index
    %c1152_106 = arith.constant 1152 : index
    %192 = vector.load %arg12[%c1_105, %c1152_106] : memref<2x2048xf32, #tpu.memory_space<vmem>>, vector<1x64xf32>
    tpu.vector_store %arg12[%c1_105, %c1152_106], %191 {strides = array<i32>} : memref<2x2048xf32, #tpu.memory_space<vmem>>, vector<1x64xf32>,
    %193 = vector.extract_strided_slice %90 {offsets = [19, 64], sizes = [1, 64], strides = [1, 1]} : vector<32x128xf32> to vector<1x64xf32>
    %c1_107 = arith.constant 1 : index
    %c1216_108 = arith.constant 1216 : index
    %194 = vector.load %arg12[%c1_107, %c1216_108] : memref<2x2048xf32, #tpu.memory_space<vmem>>, vector<1x64xf32>
    tpu.vector_store %arg12[%c1_107, %c1216_108], %193 {strides = array<i32>} : memref<2x2048xf32, #tpu.memory_space<vmem>>, vector<1x64xf32>,
    %195 = vector.extract_strided_slice %90 {offsets = [20, 64], sizes = [1, 64], strides = [1, 1]} : vector<32x128xf32> to vector<1x64xf32>
    %c1_109 = arith.constant 1 : index
    %c1280_110 = arith.constant 1280 : index
    %196 = vector.load %arg12[%c1_109, %c1280_110] : memref<2x2048xf32, #tpu.memory_space<vmem>>, vector<1x64xf32>
    tpu.vector_store %arg12[%c1_109, %c1280_110], %195 {strides = array<i32>} : memref<2x2048xf32, #tpu.memory_space<vmem>>, vector<1x64xf32>,
    %197 = vector.extract_strided_slice %90 {offsets = [21, 64], sizes = [1, 64], strides = [1, 1]} : vector<32x128xf32> to vector<1x64xf32>
    %c1_111 = arith.constant 1 : index
    %c1344_112 = arith.constant 1344 : index
    %198 = vector.load %arg12[%c1_111, %c1344_112] : memref<2x2048xf32, #tpu.memory_space<vmem>>, vector<1x64xf32>
    tpu.vector_store %arg12[%c1_111, %c1344_112], %197 {strides = array<i32>} : memref<2x2048xf32, #tpu.memory_space<vmem>>, vector<1x64xf32>,
    %199 = vector.extract_strided_slice %90 {offsets = [22, 64], sizes = [1, 64], strides = [1, 1]} : vector<32x128xf32> to vector<1x64xf32>
    %c1_113 = arith.constant 1 : index
    %c1408_114 = arith.constant 1408 : index
    %200 = vector.load %arg12[%c1_113, %c1408_114] : memref<2x2048xf32, #tpu.memory_space<vmem>>, vector<1x64xf32>
    tpu.vector_store %arg12[%c1_113, %c1408_114], %199 {strides = array<i32>} : memref<2x2048xf32, #tpu.memory_space<vmem>>, vector<1x64xf32>,
    %201 = vector.extract_strided_slice %90 {offsets = [23, 64], sizes = [1, 64], strides = [1, 1]} : vector<32x128xf32> to vector<1x64xf32>
    %c1_115 = arith.constant 1 : index
    %c1472_116 = arith.constant 1472 : index
    %202 = vector.load %arg12[%c1_115, %c1472_116] : memref<2x2048xf32, #tpu.memory_space<vmem>>, vector<1x64xf32>
    tpu.vector_store %arg12[%c1_115, %c1472_116], %201 {strides = array<i32>} : memref<2x2048xf32, #tpu.memory_space<vmem>>, vector<1x64xf32>,
    %203 = vector.extract_strided_slice %90 {offsets = [24, 64], sizes = [1, 64], strides = [1, 1]} : vector<32x128xf32> to vector<1x64xf32>
    %c1_117 = arith.constant 1 : index
    %c1536_118 = arith.constant 1536 : index
    %204 = vector.load %arg12[%c1_117, %c1536_118] : memref<2x2048xf32, #tpu.memory_space<vmem>>, vector<1x64xf32>
    tpu.vector_store %arg12[%c1_117, %c1536_118], %203 {strides = array<i32>} : memref<2x2048xf32, #tpu.memory_space<vmem>>, vector<1x64xf32>,
    %205 = vector.extract_strided_slice %90 {offsets = [25, 64], sizes = [1, 64], strides = [1, 1]} : vector<32x128xf32> to vector<1x64xf32>
    %c1_119 = arith.constant 1 : index
    %c1600_120 = arith.constant 1600 : index
    %206 = vector.load %arg12[%c1_119, %c1600_120] : memref<2x2048xf32, #tpu.memory_space<vmem>>, vector<1x64xf32>
    tpu.vector_store %arg12[%c1_119, %c1600_120], %205 {strides = array<i32>} : memref<2x2048xf32, #tpu.memory_space<vmem>>, vector<1x64xf32>,
    %207 = vector.extract_strided_slice %90 {offsets = [26, 64], sizes = [1, 64], strides = [1, 1]} : vector<32x128xf32> to vector<1x64xf32>
    %c1_121 = arith.constant 1 : index
    %c1664_122 = arith.constant 1664 : index
    %208 = vector.load %arg12[%c1_121, %c1664_122] : memref<2x2048xf32, #tpu.memory_space<vmem>>, vector<1x64xf32>
    tpu.vector_store %arg12[%c1_121, %c1664_122], %207 {strides = array<i32>} : memref<2x2048xf32, #tpu.memory_space<vmem>>, vector<1x64xf32>,
    %209 = vector.extract_strided_slice %90 {offsets = [27, 64], sizes = [1, 64], strides = [1, 1]} : vector<32x128xf32> to vector<1x64xf32>
    %c1_123 = arith.constant 1 : index
    %c1728_124 = arith.constant 1728 : index
    %210 = vector.load %arg12[%c1_123, %c1728_124] : memref<2x2048xf32, #tpu.memory_space<vmem>>, vector<1x64xf32>
    tpu.vector_store %arg12[%c1_123, %c1728_124], %209 {strides = array<i32>} : memref<2x2048xf32, #tpu.memory_space<vmem>>, vector<1x64xf32>,
    %211 = vector.extract_strided_slice %90 {offsets = [28, 64], sizes = [1, 64], strides = [1, 1]} : vector<32x128xf32> to vector<1x64xf32>
    %c1_125 = arith.constant 1 : index
    %c1792_126 = arith.constant 1792 : index
    %212 = vector.load %arg12[%c1_125, %c1792_126] : memref<2x2048xf32, #tpu.memory_space<vmem>>, vector<1x64xf32>
    tpu.vector_store %arg12[%c1_125, %c1792_126], %211 {strides = array<i32>} : memref<2x2048xf32, #tpu.memory_space<vmem>>, vector<1x64xf32>,
    %213 = vector.extract_strided_slice %90 {offsets = [29, 64], sizes = [1, 64], strides = [1, 1]} : vector<32x128xf32> to vector<1x64xf32>
    %c1_127 = arith.constant 1 : index
    %c1856_128 = arith.constant 1856 : index
    %214 = vector.load %arg12[%c1_127, %c1856_128] : memref<2x2048xf32, #tpu.memory_space<vmem>>, vector<1x64xf32>
    tpu.vector_store %arg12[%c1_127, %c1856_128], %213 {strides = array<i32>} : memref<2x2048xf32, #tpu.memory_space<vmem>>, vector<1x64xf32>,
    %215 = vector.extract_strided_slice %90 {offsets = [30, 64], sizes = [1, 64], strides = [1, 1]} : vector<32x128xf32> to vector<1x64xf32>
    %c1_129 = arith.constant 1 : index
    %c1920_130 = arith.constant 1920 : index
    %216 = vector.load %arg12[%c1_129, %c1920_130] : memref<2x2048xf32, #tpu.memory_space<vmem>>, vector<1x64xf32>
    tpu.vector_store %arg12[%c1_129, %c1920_130], %215 {strides = array<i32>} : memref<2x2048xf32, #tpu.memory_space<vmem>>, vector<1x64xf32>,
    %217 = vector.extract_strided_slice %90 {offsets = [31, 64], sizes = [1, 64], strides = [1, 1]} : vector<32x128xf32> to vector<1x64xf32>
    %c1_131 = arith.constant 1 : index
    %c1984_132 = arith.constant 1984 : index
    %218 = vector.load %arg12[%c1_131, %c1984_132] : memref<2x2048xf32, #tpu.memory_space<vmem>>, vector<1x64xf32>
    tpu.vector_store %arg12[%c1_131, %c1984_132], %217 {strides = array<i32>} : memref<2x2048xf32, #tpu.memory_space<vmem>>, vector<1x64xf32>,
    %c0_133 = arith.constant 0 : index
    %c0_134 = arith.constant 0 : index
    %219 = vector.load %arg12[%c0_133, %c0_134] : memref<2x2048xf32, #tpu.memory_space<vmem>>, vector<2x2048xf32>
    %c0_135 = arith.constant 0 : index
    %c0_136 = arith.constant 0 : index
    %220 = vector.load %arg6[%c0_135, %c0_136] : memref<2048x128xf32, #tpu.memory_space<vmem>>, vector<2048x128xf32>
    %cst_137 = arith.constant dense<0.000000e+00> : vector<2x128xf32>
    %221 = tpu.matmul %219, %220, %cst_137 {dimension_numbers = #tpu.dot_dimension_numbers<[1], [0], [0], [1], [0, 0, 1, 1], [], []>} : vector<2x2048xf32>, vector<2048x128xf32>, vector<2x128xf32> -> vector<2x128xf32>
    %c0_138 = arith.constant 0 : index
    %c0_139 = arith.constant 0 : index
    %222 = vector.load %arg7[%c0_138, %c0_139] : memref<1x128xf32, #tpu.memory_space<vmem>>, vector<1x128xf32>
    %223 = vector.broadcast %222 : vector<1x128xf32> to vector<2x128xf32>
    %224 = arith.addf %221, %223 : vector<2x128xf32>
    %225 = vector.extract_strided_slice %224 {offsets = [0, 0], sizes = [2, 64], strides = [1, 1]} : vector<2x128xf32> to vector<2x64xf32>
    %226 = vector.extract_strided_slice %224 {offsets = [0, 64], sizes = [2, 64], strides = [1, 1]} : vector<2x128xf32> to vector<2x64xf32>
    %c0_140 = arith.constant 0 : index
    %c0_141 = arith.constant 0 : index
    %227 = vector.load %arg10[%c0_140, %c0_141] : memref<2x64xf32, #tpu.memory_space<vmem>>, vector<2x64xf32>
    tpu.vector_store %arg10[%c0_140, %c0_141], %225 {strides = array<i32>} : memref<2x64xf32, #tpu.memory_space<vmem>>, vector<2x64xf32>,
    %c0_142 = arith.constant 0 : index
    %c0_143 = arith.constant 0 : index
    %228 = vector.load %arg11[%c0_142, %c0_143] : memref<2x64xf32, #tpu.memory_space<vmem>>, vector<2x64xf32>
    tpu.vector_store %arg11[%c0_142, %c0_143], %226 {strides = array<i32>} : memref<2x64xf32, #tpu.memory_space<vmem>>, vector<2x64xf32>,
    %c0_144 = arith.constant 0 : index
    %c0_145 = arith.constant 0 : index
    %229 = vector.load %arg8[%c0_144, %c0_145] : memref<2x64xf32, #tpu.memory_space<vmem>>, vector<2x64xf32>
    %cst_146 = arith.constant 5.000000e-01 : f32
    %230 = vector.broadcast %cst_146 : f32 to vector<2x64xf32>
    %231 = arith.mulf %230, %226 : vector<2x64xf32>
    %232 = math.exp %231 : vector<2x64xf32>
    %233 = arith.mulf %229, %232 : vector<2x64xf32>
    %234 = arith.addf %225, %233 : vector<2x64xf32>
    %c0_147 = arith.constant 0 : index
    %c0_148 = arith.constant 0 : index
    %235 = vector.load %arg9[%c0_147, %c0_148] : memref<2x64xf32, #tpu.memory_space<vmem>>, vector<2x64xf32>
    tpu.vector_store %arg9[%c0_147, %c0_148], %234 {strides = array<i32>} : memref<2x64xf32, #tpu.memory_space<vmem>>, vector<2x64xf32>,
    return
  }
  func.func @transform_0(%arg0: i32) -> (i32, i32, i32) {
    %c0_i32 = arith.constant 0 : i32
    %c0_i32_0 = arith.constant 0 : i32
    %c0_i32_1 = arith.constant 0 : i32
    return %arg0, %c0_i32, %c0_i32_0 : i32, i32, i32
  }
  func.func @transform_1(%arg0: i32) -> (i32, i32) {
    %c0_i32 = arith.constant 0 : i32
    %c0_i32_0 = arith.constant 0 : i32
    %c0_i32_1 = arith.constant 0 : i32
    return %c0_i32, %c0_i32_0 : i32, i32
  }
  func.func @transform_2(%arg0: i32) -> (i32, i32) {
    %c0_i32 = arith.constant 0 : i32
    %c0_i32_0 = arith.constant 0 : i32
    %c0_i32_1 = arith.constant 0 : i32
    return %c0_i32, %c0_i32_0 : i32, i32
  }
  func.func @transform_3(%arg0: i32) -> (i32, i32, i32) {
    %c0_i32 = arith.constant 0 : i32
    %c0_i32_0 = arith.constant 0 : i32
    %c0_i32_1 = arith.constant 0 : i32
    %c0_i32_2 = arith.constant 0 : i32
    return %c0_i32, %c0_i32_0, %c0_i32_1 : i32, i32, i32
  }
  func.func @transform_4(%arg0: i32) -> (i32, i32) {
    %c0_i32 = arith.constant 0 : i32
    %c0_i32_0 = arith.constant 0 : i32
    %c0_i32_1 = arith.constant 0 : i32
    return %c0_i32, %c0_i32_0 : i32, i32
  }
  func.func @transform_5(%arg0: i32) -> (i32, i32) {
    %c0_i32 = arith.constant 0 : i32
    %c0_i32_0 = arith.constant 0 : i32
    %c0_i32_1 = arith.constant 0 : i32
    return %c0_i32, %c0_i32_0 : i32, i32
  }
  func.func @transform_6(%arg0: i32) -> (i32, i32) {
    %c0_i32 = arith.constant 0 : i32
    %c0_i32_0 = arith.constant 0 : i32
    %c0_i32_1 = arith.constant 0 : i32
    return %c0_i32, %c0_i32_0 : i32, i32
  }
  func.func @transform_7(%arg0: i32) -> (i32, i32) {
    %c0_i32 = arith.constant 0 : i32
    %c0_i32_0 = arith.constant 0 : i32
    return %arg0, %c0_i32 : i32, i32
  }
  func.func @transform_8(%arg0: i32) -> (i32, i32) {
    %c0_i32 = arith.constant 0 : i32
    %c0_i32_0 = arith.constant 0 : i32
    return %arg0, %c0_i32 : i32, i32
  }
  func.func @transform_9(%arg0: i32) -> (i32, i32) {
    %c0_i32 = arith.constant 0 : i32
    %c0_i32_0 = arith.constant 0 : i32
    return %arg0, %c0_i32 : i32, i32
  }
  func.func @transform_10(%arg0: i32) -> (i32, i32) {
    %c0_i32 = arith.constant 0 : i32
    %c0_i32_0 = arith.constant 0 : i32
    return %arg0, %c0_i32 : i32, i32
  }
}

</mosaic_0001>

<bundles_post_ra>
// kernel: cnn_encoder_forward.1
= control target key start
LH: loop header
LB: loop body
LE: loop exit
PB: predicated region body
PF: predicated region fallthrough
CT: control target
= control target key end

     0   :  { %16 = vsyncpa [#allocation4], 0  ;;  %v2484_v1 = vmov 2   ;;  %v2485_v2 = vmov 1   ;;  %s3724_s0 = inlined_call_operand.vmem [shape: f32[1,1,128], index: 0, kind: input, shape index: {}]   ;;  %s3725_s1 = inlined_call_operand.vmem [shape: f32[16,3], index: 1, kind: input, shape index: {}]   ;;  %s3726_s2 = inlined_call_operand.vmem [shape: f32[16,1], index: 2, kind: input, shape index: {}]   ;;  %s3727_s3 = inlined_call_operand.vmem [shape: f32[3,32,16], index: 3, kind: input, shape index: {}]   ;;  %s3728_s4 = inlined_call_operand.vmem [shape: f32[32,1], index: 4, kind: input, shape index: {}]   ;;  %s3729_s5 = inlined_call_operand.vmem [shape: f32[2048,128], index: 5, kind: input, shape index: {}]   ;;  %s3730_s6 = inlined_call_operand.vmem [shape: f32[1,128], index: 6, kind: input, shape index: {}]   ;;  %s3731_s7 = inlined_call_operand.vmem [shape: f32[2,64], index: 7, kind: input, shape index: {}]   ;;  %s3732_s8 = inlined_call_operand.hbm [shape: f32[2,64], index: 8, kind: output, shape index: {0}]   ;;  %s3733_s9 = inlined_call_operand.hbm [shape: f32[2,64], index: 9, kind: output, shape index: {1}]   ;;  %s3734_s10 = inlined_call_operand.hbm [shape: f32[2,64], index: 10, kind: output, shape index: {2}]  }
   0x1   :  { %v51_v0 = vld [vmem:[%s3725_s1] sm:$0xff]  ;;  %2395 = vset.pattern.permute.xlu0 %v2484_v1  ;;  %2394 = vset.pattern.permute.xlu1 %v2485_v2  ;;  %v52_v3 = vld [vmem:[%s3725_s1 + $0x8] sm:$0xff] }
   0x2   :  { %94 = vperm.xlu0 %2395, %v51_v0   ;;  %73 = vperm.xlu1 %2394, %v51_v0  }
   0x3   :  { %17 = vsyncpa [#allocation6], 0  ;;  %v2486_v4 = vmov 0   ;;  %v50_v5 = vld [vmem:[%s3724_s0] sm:$0x1]  ;;  %s2487_s19 = smov 127   ;;  %v34_v12 = vlaneseq }
   0x4   :  { %s2488_s20 = smov 1   ;;  %v110_v6 = vld [vmem:[%s3726_s2 + $0x8] sm:$0xff]  ;;  %v109_v7 = vld [vmem:[%s3726_s2] sm:$0xff]  ;;  %v453_v9 = vld [vmem:[%s3728_s4 + $0x10] sm:$0xff]  ;;  %vm142_vm2 = vcmask 130048   ;;  %vm483_vm5 = vcmask 516096  }
   0x5   :  { %v451_v8 = vld [vmem:[%s3728_s4] sm:$0xff]  ;;  %v35_v13 = vand.u32 127, %v34_v12  ;;  %v2572_v15 = vshrl.u32 %v34_v12, 7  ;;  %v1752_v50 = vld [vmem:[%s3727_s3 + $0x28] sm:$0xff]  ;;  %v1753_v51 = vld [vmem:[%s3727_s3 + $0x30] sm:$0xff]  ;;  %s2490_s13 = smov 64  }
   0x6   :  { %2396 = vset.pattern.permute.xlu0 %v2486_v4  ;;  %77 = vperm.xlu1 %2394, %v52_v3   ;;  %v125_v42 = vld [vmem:[%s3727_s3] sm:$0xff]  ;;  %v452_v52 = vld [vmem:[%s3728_s4 + $0x8] sm:$0xff]  ;;  %v1754_v53 = vld [vmem:[%s3727_s3 + $0x38] sm:$0xff]  ;;  %vm498_vm6 = vcmask 1040896   ;;  %vm1692_vm7 = vcmask 517120  }
   0x7   :  { %58 = vperm.xlu0 %2396, %v51_v0   ;;  %v40_v17 = vand.u32 63, %v35_v13  ;;  %v68_v18 = vsub.s32 0, %v2572_v15  ;;  %2088 = vmatprep.mubr.msk.f32.mxu0 %vm142_vm2, %v125_v42  ;;  %v1751_v49 = vld [vmem:[%s3727_s3 + $0x20] sm:$0xff]  ;;  %v126_v61 = vld [vmem:[%s3727_s3 + $0x8] sm:$0xff]  ;;  %v127_v63 = vld [vmem:[%s3727_s3 + $0x10] sm:$0xff] }
   0x8   :  { %2078 = vmatprep.mubr.msk.f32.mxu1 %vm142_vm2, %v1751_v49  ;;  %v128_v0 = vld [vmem:[%s3727_s3 + $0x18] sm:$0xff]  ;;  %v1766_v2 = vld [vmem:[%s3727_s3 + $0x48] sm:$0xff]  ;;  %v799_v21 = vld [vmem:[%s3729_s5 + $0x90] sm:$0xff] }
   0x9   :  { %vm2575_vm0 = vcmp.ne.s32.totalorder %v40_v17, 63  ;;  %vm2579_vm1 = vcmp.ne.s32.totalorder %v40_v17, 0  ;;  %v84_v23 = vrot.slane %v50_v5, %v68_v18  ;;  %v782_v13 = vld [vmem:[%s3729_s5 + $0x8] sm:$0xff] }
   0xa   :  { %2397 = vset.pattern.permute.xlu1 %v2484_v1  ;;  %vm2109_vm3 = vmpackc.low %vm2579_vm1, %vm2579_vm1  ;;  %v1765_v1 = vld [vmem:[%s3727_s3 + $0x40] sm:$0xff] }
   0xb   :  { %63 = vperm.xlu0 %2396, %v52_v3   ;;  %98 = vperm.xlu1 %2397, %v52_v3   ;;  %vm2115_vm4 = vmpackc.low %vm2575_vm0, %vm2575_vm0  ;;  %v1767_v3 = vld [vmem:[%s3727_s3 + $0x50] sm:$0xff] }
   0xf   :  { %90 = vrot.lane.b32.xlu0 %v50_v5, %s2487_s19  ;;  %53 = vrot.lane.b32.xlu1 %v50_v5, %s2488_s20 }
  0x10   :  { %2398 = vset.pattern.permute.xlu1 %v2486_v4  ;;  %v1768_v4 = vld [vmem:[%s3727_s3 + $0x58] sm:$0xff] }
  0x13   :  { %118 = vperm.xlu0 %2396, %v110_v6   ;;  %113 = vperm.xlu1 %2398, %v109_v7  }
  0x17   :  { %457 = vperm.xlu0 %2396, %v451_v8  }
  0x1b   :  { %467 = vperm.xlu0 %2396, %v453_v9   ;;  %v797_v9 = vld [vmem:[%s3729_s5 + $0x80] sm:$0xff] }
  0x81   :  { %v74_v10 = vpop.permute.xlu1 %73  ;;  %v95_v11 = vpop.permute.xlu0 %94 }
  0x82   :  { %v86_v30 = vmul.f32 %v84_v23, %v74_v10  ;;  %v798_v10 = vld [vmem:[%s3729_s5 + $0x88] sm:$0xff] }
  0x83   :  { %v2120_v12 = vpack.c.bf16 %v798_v10, %v797_v9  ;;  %v820_v9 = vld [vmem:[%s3729_s5 + $0x138] sm:$0xff] }
  0x85   :  { %v78_v14 = vpop.permute.xlu1 %77 }
  0x86   :  { %v59_v16 = vpop.permute.xlu0 %58  ;;  %v87_v31 = vmul.f32 %v84_v23, %v78_v14  ;;  %v829_v14 = vld [vmem:[%s3729_s5 + $0x180] sm:$0xff]  ;;  %v800_v23 = vld [vmem:[%s3729_s5 + $0x98] sm:$0xff] }
  0x8a   :  { %v64_v19 = vpop.permute.xlu0 %63  ;;  %v99_v20 = vpop.permute.xlu1 %98 }
  0x8e   :  { %v91_v24 = vpop.permute.xlu0 %90  ;;  %v54_v25 = vpop.permute.xlu1 %53 }
  0x8f   :  { %v92_v26 = vsel %vm2575_vm0, %v91_v24, 0.0  ;;  %v55_v27 = vsel %vm2579_vm1, %v54_v25, 0.0  ;;  %v783_v24 = vld [vmem:[%s3729_s5 + $0x10] sm:$0xff]  ;;  %v784_v25 = vld [vmem:[%s3729_s5 + $0x18] sm:$0xff] }
  0x90   :  { %v104_v28 = vrot.slane %v92_v26, %v68_v18  ;;  %v69_v29 = vrot.slane %v55_v27, %v68_v18  ;;  %v2124_v26 = vpack.c.bf16 %v800_v23, %v799_v21  ;;  %v2126_v27 = vpack.c.bf16 %v784_v25, %v783_v24  ;;  %v837_v24 = vld [vmem:[%s3729_s5 + $0x1c0] sm:$0xff]  ;;  %v838_v25 = vld [vmem:[%s3729_s5 + $0x1c8] sm:$0xff] }
  0x92   :  { %v70_v32 = vmul.f32 %v69_v29, %v59_v16  ;;  %v71_v33 = vmul.f32 %v69_v29, %v64_v19  ;;  %v105_v34 = vmul.f32 %v104_v28, %v95_v11  ;;  %v106_v35 = vmul.f32 %v104_v28, %v99_v20  ;;  %v114_v38 = vpop.permute.xlu1 %113  ;;  %v119_v41 = vpop.permute.xlu0 %118  ;;  %v781_v11 = vld [vmem:[%s3729_s5] sm:$0xff]  ;;  %v830_v16 = vld [vmem:[%s3729_s5 + $0x188] sm:$0xff] }
  0x93   :  { %v2122_v17 = vpack.c.bf16 %v782_v13, %v781_v11  ;;  %v2152_v18 = vpack.c.bf16 %v830_v16, %v829_v14  ;;  %v813_v19 = vld [vmem:[%s3729_s5 + $0x100] sm:$0xff]  ;;  %v814_v20 = vld [vmem:[%s3729_s5 + $0x108] sm:$0xff]  ;;  %v2489_v28 = vmov 1983009808  }
  0x94   :  { %v89_v36 = vadd.f32 %v87_v31, %v71_v33  ;;  %v88_v37 = vadd.f32 %v86_v30, %v70_v32  ;;  %v2154_v22 = vpack.c.bf16 %v814_v20, %v813_v19  ;;  %v487_v29 = vunpack.c.l.s4 %v2489_v28  ;;  %v831_v30 = vld [vmem:[%s3729_s5 + $0x190] sm:$0xff]  ;;  %v832_v31 = vld [vmem:[%s3729_s5 + $0x198] sm:$0xff]  ;;  %v806_v13 = vld [vmem:[%s3729_s5 + $0xc8] sm:$0xff] }
  0x95   :  { %v2156_v32 = vpack.c.bf16 %v832_v31, %v831_v30  ;;  %v815_v33 = vld [vmem:[%s3729_s5 + $0x110] sm:$0xff]  ;;  %v790_v19 = vld [vmem:[%s3729_s5 + $0x48] sm:$0xff]  ;;  %v2168_v28 = vpack.c.bf16 %v838_v25, %v837_v24  ;;  %v454_v25 = vld [vmem:[%s3728_s4 + $0x18] sm:$0xff] }
  0x96   :  { %v108_v39 = vadd.f32 %v106_v35, %v89_v36  ;;  %v107_v40 = vadd.f32 %v105_v34, %v88_v37  ;;  %v816_v34 = vld [vmem:[%s3729_s5 + $0x118] sm:$0xff]  ;;  %v801_v36 = vld [vmem:[%s3729_s5 + $0xa0] sm:$0xff]  ;;  %v802_v37 = vld [vmem:[%s3729_s5 + $0xa8] sm:$0xff] }
  0x97   :  { %v2158_v35 = vpack.c.bf16 %v816_v34, %v815_v33  ;;  %v821_v33 = vld [vmem:[%s3729_s5 + $0x140] sm:$0xff]  ;;  %v862_v24 = vld [vmem:[%s3729_s5 + $0x288] sm:$0xff] }
  0x98   :  { %v122_v43 = vadd.f32 %v119_v41, %v108_v39  ;;  %v121_v44 = vadd.f32 %v114_v38, %v107_v40  ;;  %v488_v38 = vunpack.c.0.s8 %v487_v29  ;;  %v2128_v39 = vpack.c.bf16 %v802_v37, %v801_v36  ;;  %v785_v40 = vld [vmem:[%s3729_s5 + $0x20] sm:$0xff]  ;;  %v786_v41 = vld [vmem:[%s3729_s5 + $0x28] sm:$0xff] }
  0x99   :  { %v822_v37 = vld [vmem:[%s3729_s5 + $0x148] sm:$0xff] }
  0x9a   :  { %v124_v45 = vmax.f32 %v122_v43, 0.0  ;;  %v123_v46 = vmax.f32 %v121_v44, 0.0  ;;  %v2130_v43 = vpack.c.bf16 %v786_v41, %v785_v40  ;;  %v833_v44 = vld [vmem:[%s3729_s5 + $0x1a0] sm:$0xff]  ;;  %v791_v40 = vld [vmem:[%s3729_s5 + $0x50] sm:$0xff]  ;;  %v792_v41 = vld [vmem:[%s3729_s5 + $0x58] sm:$0xff] }
  0x9c   :  { %v2399_v47 = vpack.i.bf16 %v124_v45, %v123_v46  ;;  %v2104_v48 = vpack.c.bf16 %v124_v45, %v123_v46  ;;  %v834_v45 = vld [vmem:[%s3729_s5 + $0x1a8] sm:$0xff]  ;;  %v458_v46 = vpop.permute.xlu0 %457 }
  0x9d   :  { %v2160_v49 = vpack.c.bf16 %v834_v45, %v833_v44 }
  0x9e   :  { %2400 = vrot.lane.b32.xlu1 %v2399_v47, %s2488_s20  ;;  %2105 = vmatprep.subr.bf16.mxu1 %v2104_v48 }
  0x9f   :  { %2107 = vmatpush3.bf16.msra.mxu1 %v2104_v48 }
  0xa0   :  { %2121 = vmatprep.subr.bf16.mxu1 %v2120_v12  ;;  %v468_v14 = vpop.permute.xlu0 %467 }
  0xa2   :  { %2405 = vrot.lane.b32.xlu1 %v2399_v47, %s2487_s19  ;;  %2079 = vmatmul.mubr.msk.f32.vlgmr.msra.gmra.mrb[0].mxu1 %vm142_vm2, %v1752_v50  ;;  %v817_v50 = vld [vmem:[%s3729_s5 + $0x120] sm:$0xff] }
  0xa3   :  { %2081 = vmatprep.mubr.msk.f32.mxu1 %vm142_vm2, %v1753_v51  ;;  %2123 = vmatpush3.bf16.msra.mxu1 %v2122_v17  ;;  %v818_v51 = vld [vmem:[%s3729_s5 + $0x128] sm:$0xff] }
  0xa4   :  { %2125 = vmatprep.subr.bf16.mxu1 %v2124_v26 }
  0xa6   :  { %462 = vperm.xlu1 %2398, %v452_v52   ;;  %2082 = vmatmul.mubr.msk.f32.gmra.mrb[2].mxu1 %vm142_vm2, %v1754_v53 }
  0xa7   :  { %2127 = vmatpush3.bf16.msra.mxu1 %v2126_v27 }
  0xa8   :  { %2129 = vmatprep.subr.bf16.mxu1 %v2128_v39  ;;  %v808_v39 = vld [vmem:[%s3729_s5 + $0xd8] sm:$0xff] }
  0xab   :  { %2131 = vmatpush3.bf16.msra.mxu1 %v2130_v43 }
 0x110   :  { %v2401_v54 = vpop.permute.xlu1 %2400 }
 0x111   :  { %v2403_v55 = vunpack.i.h.bf16 %v2401_v54  ;;  %v2402_v56 = vunpack.i.l.bf16 %v2401_v54  ;;  %v2162_v54 = vpack.c.bf16 %v818_v51, %v817_v50  ;;  %v809_v51 = vld [vmem:[%s3729_s5 + $0xe0] sm:$0xff] }
 0x113   :  { %v2108_v57 = vpack.c.bf16 %v2403_v55, %v2402_v56  ;;  %v803_v55 = vld [vmem:[%s3729_s5 + $0xb0] sm:$0xff]  ;;  %v804_v56 = vld [vmem:[%s3729_s5 + $0xb8] sm:$0xff] }
 0x114   :  { %v2406_v58 = vpop.permute.xlu1 %2405 }
 0x115   :  { %v2408_v59 = vunpack.i.h.bf16 %v2406_v58  ;;  %v2407_v60 = vunpack.i.l.bf16 %v2406_v58  ;;  %2110 = vmatprep.subr.msk.bf16.mxu0 %vm2109_vm3, %v2108_v57 }
 0x116   :  { %2113 = vmatpush3.bf16.msk.msra.mxu0 %vm2109_vm3, %v2108_v57  ;;  %v2729_v57 = vsub.s32 %v488_v38, %v2572_v15  ;;  %v835_v15 = vld [vmem:[%s3729_s5 + $0x1b0] sm:$0xff] }
 0x117   :  { %v2114_v62 = vpack.c.bf16 %v2408_v59, %v2407_v60  ;;  %v2132_v59 = vpack.c.bf16 %v804_v56, %v803_v55  ;;  %v787_v60 = vld [vmem:[%s3729_s5 + $0x30] sm:$0xff] }
 0x118   :  { %v807_v38 = vld [vmem:[%s3729_s5 + $0xd0] sm:$0xff] }
 0x119   :  { %2089 = vmatmul.mubr.msk.f32.vlgmr.msra.gmra.mrb[0].mxu0 %vm142_vm2, %v126_v61  ;;  %2116 = vmatprep.subr.msk.bf16.mxu0 %vm2115_vm4, %v2114_v62  ;;  %v788_v61 = vld [vmem:[%s3729_s5 + $0x38] sm:$0xff]  ;;  %v2140_v50 = vpack.c.bf16 %v808_v39, %v807_v38 }
 0x11a   :  { %2119 = vmatpush3.bf16.msk.msra.mxu0 %vm2115_vm4, %v2114_v62  ;;  %2091 = vmatprep.mubr.msk.f32.mxu0 %vm142_vm2, %v127_v63 }
 0x11b   :  { %2153 = vmatprep.subr.bf16.mxu0 %v2152_v18  ;;  %2133 = vmatprep.subr.bf16.mxu1 %v2132_v59  ;;  %v794_v59 = vld [vmem:[%s3729_s5 + $0x68] sm:$0xff] }
 0x11d   :  { %2092 = vmatmul.mubr.msk.f32.gmra.mrb[2].mxu0 %vm142_vm2, %v128_v0  ;;  %v2134_v0 = vpack.c.bf16 %v788_v61, %v787_v60  ;;  %v841_v60 = vld [vmem:[%s3729_s5 + $0x1e0] sm:$0xff]  ;;  %v842_v61 = vld [vmem:[%s3729_s5 + $0x1e8] sm:$0xff] }
 0x11e   :  { %2098 = vmatprep.mubr.msk.f32.mxu0 %vm142_vm2, %v1765_v1  ;;  %v836_v1 = vld [vmem:[%s3729_s5 + $0x1b8] sm:$0xff] }
 0x11f   :  { %2135 = vmatpush3.bf16.msra.mxu1 %v2134_v0 }
 0x121   :  { %2099 = vmatmul.mubr.msk.f32.vlgmr.msra.gmra.mrb[0].mxu0 %vm142_vm2, %v1766_v2 }
 0x122   :  { %2101 = vmatprep.mubr.msk.f32.mxu0 %vm142_vm2, %v1767_v3  ;;  %2155 = vmatpush3.bf16.msra.mxu0 %v2154_v22 }
 0x123   :  { %2157 = vmatprep.subr.bf16.mxu0 %v2156_v32 }
 0x125   :  { %2102 = vmatmul.mubr.msk.f32.gmra.mrb[2].mxu0 %vm142_vm2, %v1768_v4  ;;  %v463_v52 = vpop.permute.xlu1 %462 }
 0x126   :  { %2159 = vmatpush3.bf16.msra.mxu0 %v2158_v35 }
 0x127   :  { %2161 = vmatprep.subr.bf16.mxu0 %v2160_v49  ;;  %v2170_v49 = vpack.c.bf16 %v822_v37, %v821_v33 }
 0x12a   :  { %2163 = vmatpush3.bf16.msra.mxu0 %v2162_v54 }
 0x175   :  { %v2080_v5 = vpop.f32.mrb[0].mxu1 }
 0x176   :  { %v221_v6 = vpop.f32.mrb[1].mxu1 }
 0x179   :  { %v2646_v7 = vpop.f32.mrb[2].mxu1 }
 0x17a   :  { %v2648_v8 = vpop.f32.mrb[3].mxu1 }
 0x1f4   :  { %v2100_v42 = vpop.f32.mrb[0].mxu0 }
 0x1f5   :  { %v2376_v47 = vadd.f32 %v2100_v42, %v2080_v5  ;;  %v428_v48 = vpop.f32.mrb[1].mxu0  ;;  %v2164_v5 = vpack.c.bf16 %v836_v1, %v835_v15  ;;  %v839_v42 = vld [vmem:[%s3729_s5 + $0x1d0] sm:$0xff]  ;;  %v825_v15 = vld [vmem:[%s3729_s5 + $0x160] sm:$0xff] }
 0x1f6   :  { %v2377_v53 = vadd.f32 %v428_v48, %v221_v6  ;;  %v819_v6 = vld [vmem:[%s3729_s5 + $0x130] sm:$0xff]  ;;  %v824_v48 = vld [vmem:[%s3729_s5 + $0x158] sm:$0xff] }
 0x1f7   :  { %v476_v58 = vadd.f32 %v2376_v47, %v463_v52  ;;  %v2166_v12 = vpack.c.bf16 %v820_v9, %v819_v6  ;;  %2165 = vmatprep.subr.bf16.mxu0 %v2164_v5  ;;  %v823_v47 = vld [vmem:[%s3729_s5 + $0x150] sm:$0xff]  ;;  %v810_v52 = vld [vmem:[%s3729_s5 + $0xe8] sm:$0xff]  ;;  %v812_v9 = vld [vmem:[%s3729_s5 + $0xf8] sm:$0xff] }
 0x1f8   :  { %v475_v62 = vadd.f32 %v2377_v53, %v458_v46  ;;  %v2103_v63 = vpop.f32.mrb[2].mxu0  ;;  %v840_v46 = vld [vmem:[%s3729_s5 + $0x1d8] sm:$0xff]  ;;  %v793_v53 = vld [vmem:[%s3729_s5 + $0x60] sm:$0xff]  ;;  %v2174_v0 = vpack.c.bf16 %v824_v48, %v823_v47  ;;  %v826_v5 = vld [vmem:[%s3729_s5 + $0x168] sm:$0xff] }
 0x1f9   :  { %v480_v2 = vmax.f32 %v476_v58, 0.0  ;;  %v2744_v3 = vadd.f32 %v2103_v63, %v2646_v7  ;;  %v438_v4 = vpop.f32.mrb[3].mxu0  ;;  %v805_v7 = vld [vmem:[%s3729_s5 + $0xc0] sm:$0xff]  ;;  %2167 = vmatpush3.bf16.msra.mxu0 %v2166_v12  ;;  %v2172_v63 = vpack.c.bf16 %v840_v46, %v839_v42  ;;  %v811_v6 = vld [vmem:[%s3729_s5 + $0xf0] sm:$0xff] }
 0x1fa   :  { %v479_v10 = vmax.f32 %v475_v62, 0.0  ;;  %v2379_v11 = vadd.f32 %v438_v4, %v2648_v8  ;;  %v2136_v18 = vpack.c.bf16 %v806_v13, %v805_v7  ;;  %v789_v8 = vld [vmem:[%s3729_s5 + $0x40] sm:$0xff]  ;;  %2169 = vmatprep.subr.bf16.mxu0 %v2168_v28  ;;  %v2142_v62 = vpack.c.bf16 %v792_v41, %v791_v40  ;;  %v795_v12 = vld [vmem:[%s3729_s5 + $0x70] sm:$0xff] }
 0x1fb   :  { %v558_v16 = vcombine.high %v480_v2, %v480_v2  ;;  %v2760_v17 = vrot.slane %v480_v2, %v2729_v57  ;;  %534 = vst.msk [vmem:[#allocation2 + $0x8] sm:$0x1] %vm483_vm5, %v480_v2  ;;  %v2138_v23 = vpack.c.bf16 %v790_v19, %v789_v8  ;;  %v2144_v4 = vpack.c.bf16 %v810_v52, %v809_v51  ;;  %v827_v19 = vld [vmem:[%s3729_s5 + $0x170] sm:$0xff] }
 0x1fc   :  { %v509_v20 = vcombine.high %v479_v10, %v479_v10  ;;  %v477_v21 = vadd.f32 %v2379_v11, %v468_v14  ;;  %v492_v22 = vrot.slane %v479_v10, %v2729_v57  ;;  %484 = vst.msk [vmem:[#allocation2] sm:$0x1] %vm483_vm5, %v479_v10  ;;  %2137 = vmatprep.subr.bf16.mxu1 %v2136_v18  ;;  %v796_v14 = vld [vmem:[%s3729_s5 + $0x78] sm:$0xff] }
 0x1fd   :  { %v2779_v26 = vcombine.high %v2760_v17, %v2760_v17  ;;  %v2782_v27 = vrot.slane %v558_v16, %v2729_v57  ;;  %2139 = vmatpush3.bf16.msra.mxu1 %v2138_v23  ;;  %2171 = vmatpush3.bf16.msra.mxu0 %v2170_v49  ;;  %v2146_v10 = vpack.c.bf16 %v794_v59, %v793_v53  ;;  %v843_v16 = vld [vmem:[%s3729_s5 + $0x1f0] sm:$0xff]  ;;  %v844_v18 = vld [vmem:[%s3729_s5 + $0x1f8] sm:$0xff]  ;;  %v861_v23 = vld [vmem:[%s3729_s5 + $0x280] sm:$0xff] }
 0x1fe   :  { %v481_v29 = vmax.f32 %v477_v21, 0.0  ;;  %681 = vrot.lane.b32.xlu1 %v492_v22, %s2490_s13  ;;  %v500_v30 = vcombine.high %v492_v22, %v492_v22  ;;  %v2786_v31 = vrot.slane %v509_v20, %v2729_v57  ;;  %v493_v36 = vrot.slane %v492_v22, 7  ;;  %2141 = vmatprep.subr.bf16.mxu1 %v2140_v50  ;;  %v828_v22 = vld [vmem:[%s3729_s5 + $0x178] sm:$0xff]  ;;  %v845_v59 = vld [vmem:[%s3729_s5 + $0x200] sm:$0xff] }
 0x1ff   :  { %v2790_v32 = vcombine.high %v2782_v27, %v2782_v27  ;;  %551 = vst.msk [vmem:[#allocation2 + $0xa] sm:$0x1] %vm483_vm5, %v2779_v26  ;;  %567 = vst.msk [vmem:[#allocation2 + $0xc] sm:$0x1] %vm483_vm5, %v2782_v27  ;;  %2173 = vmatprep.subr.bf16.mxu0 %v2172_v63  ;;  %v2176_v11 = vpack.c.bf16 %v842_v61, %v841_v60  ;;  %v2148_v13 = vpack.c.bf16 %v812_v9, %v811_v6  ;;  %v846_v60 = vld [vmem:[%s3729_s5 + $0x208] sm:$0xff]  ;;  %v863_v63 = vld [vmem:[%s3729_s5 + $0x290] sm:$0xff] }
 0x200   :  { %v607_v34 = vcombine.high %v481_v29, %v481_v29  ;;  %687 = vrot.lane.b32.xlu0 %v500_v30, %s2490_s13  ;;  %v2802_v35 = vcombine.high %v2786_v31, %v2786_v31  ;;  %502 = vst.msk [vmem:[#allocation2 + $0x2] sm:$0x1] %vm483_vm5, %v500_v30  ;;  %518 = vst.msk [vmem:[#allocation2 + $0x4] sm:$0x1] %vm483_vm5, %v2786_v31  ;;  %v503_v43 = vrot.slane %v500_v30, 7  ;;  %v2858_v54 = vrot.slane %v493_v36, 2 }
 0x201   :  { %583 = vst.msk [vmem:[#allocation2 + $0x10] sm:$0x1] %vm483_vm5, %v481_v29  ;;  %576 = vst.msk [vmem:[#allocation2 + $0xe] sm:$0x1] %vm483_vm5, %v2790_v32  ;;  %v2831_v44 = vrot.slane %v481_v29, %v2729_v57  ;;  %v519_v55 = vrot.slane %v2786_v31, 7  ;;  %2143 = vmatpush3.bf16.msra.mxu1 %v2142_v62  ;;  %2175 = vmatpush3.bf16.msra.mxu0 %v2174_v0  ;;  %v2178_v8 = vpack.c.bf16 %v826_v5, %v825_v15  ;;  %v893_v30 = vld [vmem:[%s3729_s5 + $0x380] sm:$0xff] }
 0x202   :  { %693 = vrot.lane.b32.xlu1 %v2786_v31, %s2490_s13  ;;  %v2834_v45 = vrot.slane %v607_v34, %v2729_v57  ;;  %527 = vst.msk [vmem:[#allocation2 + $0x6] sm:$0x1] %vm483_vm5, %v2802_v35  ;;  %v2885_v1 = vrot.slane %v503_v43, 2  ;;  %v528_v2 = vrot.slane %v2802_v35, 7  ;;  %2145 = vmatprep.subr.bf16.mxu1 %v2144_v4  ;;  %v2180_v21 = vpack.c.bf16 %v844_v18, %v843_v16  ;;  %v894_v31 = vld [vmem:[%s3729_s5 + $0x388] sm:$0xff]  ;;  %v864_v0 = vld [vmem:[%s3729_s5 + $0x298] sm:$0xff] }
 0x203   :  { %v2863_v56 = vcombine.high %v2831_v44, %v2831_v44  ;;  %v2906_v7 = vrot.slane %v519_v55, 2  ;;  %2177 = vmatprep.subr.bf16.mxu0 %v2176_v11  ;;  %v2150_v28 = vpack.c.bf16 %v796_v14, %v795_v12  ;;  %v2184_v29 = vpack.c.bf16 %v862_v24, %v861_v23  ;;  %v877_v15 = vld [vmem:[%s3729_s5 + $0x300] sm:$0xff]  ;;  %v895_v6 = vld [vmem:[%s3729_s5 + $0x390] sm:$0xff]  ;;  %v896_v9 = vld [vmem:[%s3729_s5 + $0x398] sm:$0xff] }
 0x204   :  { %699 = vrot.lane.b32.xlu0 %v2802_v35, %s2490_s13  ;;  %v2867_v58 = vcombine.high %v2834_v45, %v2834_v45  ;;  %616 = vst.msk [vmem:[#allocation2 + $0x14] sm:$0x1] %vm483_vm5, %v2834_v45  ;;  %v2922_v20 = vrot.slane %v528_v2, 2  ;;  %v2182_v33 = vpack.c.bf16 %v828_v22, %v827_v19  ;;  %v2216_v34 = vpack.c.bf16 %v894_v31, %v893_v30  ;;  %v847_v12 = vld [vmem:[%s3729_s5 + $0x210] sm:$0xff]  ;;  %v865_v16 = vld [vmem:[%s3729_s5 + $0x2a0] sm:$0xff]  ;;  %v866_v18 = vld [vmem:[%s3729_s5 + $0x2a8] sm:$0xff] }
 0x205   :  { %600 = vst.msk [vmem:[#allocation2 + $0x12] sm:$0x1] %vm483_vm5, %v2863_v56  ;;  %2147 = vmatpush3.bf16.msra.mxu1 %v2146_v10  ;;  %2179 = vmatpush3.bf16.msra.mxu0 %v2178_v8  ;;  %v543_v35 = vrot.slane %v2760_v17, 7  ;;  %v552_v36 = vrot.slane %v2779_v26, 7  ;;  %v568_v38 = vrot.slane %v2782_v27, 7  ;;  %v577_v40 = vrot.slane %v2790_v32, 7 }
 0x206   :  { %495 = vrot.lane.b32.xlu1 %v2858_v54, %s2490_s13  ;;  %625 = vst.msk [vmem:[#allocation2 + $0x16] sm:$0x1] %vm483_vm5, %v2867_v58  ;;  %2149 = vmatprep.subr.bf16.mxu1 %v2148_v13  ;;  %v617_v42 = vrot.slane %v2834_v45, 7  ;;  %v626_v46 = vrot.slane %v2867_v58, 7  ;;  %v2186_v4 = vpack.c.bf16 %v846_v60, %v845_v59  ;;  %v2188_v11 = vpack.c.bf16 %v864_v0, %v863_v63  ;;  %v879_v19 = vld [vmem:[%s3729_s5 + $0x310] sm:$0xff]  ;;  %v897_v23 = vld [vmem:[%s3729_s5 + $0x3a0] sm:$0xff] }
 0x207   :  { %2181 = vmatprep.subr.bf16.mxu0 %v2180_v21  ;;  %v544_v37 = vrot.slane %v543_v35, 2  ;;  %v2956_v39 = vrot.slane %v552_v36, 2  ;;  %v2962_v41 = vrot.slane %v577_v40, 2  ;;  %v2220_v8 = vpack.c.bf16 %v896_v9, %v895_v6  ;;  %v898_v24 = vld [vmem:[%s3729_s5 + $0x3a8] sm:$0xff]  ;;  %v849_v30 = vld [vmem:[%s3729_s5 + $0x220] sm:$0xff]  ;;  %v872_v6 = vld [vmem:[%s3729_s5 + $0x2d8] sm:$0xff] }
 0x208   :  { %505 = vrot.lane.b32.xlu0 %v2885_v1, %s2490_s13  ;;  %v2990_v47 = vrot.slane %v626_v46, 2  ;;  %v850_v31 = vld [vmem:[%s3729_s5 + $0x228] sm:$0xff]  ;;  %v2224_v36 = vpack.c.bf16 %v898_v24, %v897_v23  ;;  %v885_v9 = vld [vmem:[%s3729_s5 + $0x340] sm:$0xff] }
 0x209   :  { %2151 = vmatpush3.bf16.msra.mxu1 %v2150_v28  ;;  %2183 = vmatpush3.bf16.msra.mxu0 %v2182_v33  ;;  %v874_v23 = vld [vmem:[%s3729_s5 + $0x2e8] sm:$0xff] }
 0x20a   :  { %521 = vrot.lane.b32.xlu1 %v2906_v7, %s2490_s13  ;;  %2185 = vmatprep.subr.bf16.mxu1 %v2184_v29  ;;  %v2192_v29 = vpack.c.bf16 %v866_v18, %v865_v16 }
 0x20b   :  { %2217 = vmatprep.subr.bf16.mxu0 %v2216_v34  ;;  %v868_v34 = vld [vmem:[%s3729_s5 + $0x2b8] sm:$0xff] }
 0x20c   :  { %530 = vrot.lane.b32.xlu0 %v2922_v20, %s2490_s13 }
 0x20e   :  { %472 = vperm.xlu1 %2398, %v454_v25  }
 0x210   :  { %705 = vrot.lane.b32.xlu0 %v2760_v17, %s2490_s13  ;;  %v569_v17 = vrot.slane %v568_v38, 2  ;;  %v882_v38 = vld [vmem:[%s3729_s5 + $0x328] sm:$0xff] }
 0x212   :  { %711 = vrot.lane.b32.xlu1 %v2779_v26, %s2490_s13  ;;  %v592_v26 = vrot.slane %v2831_v44, 7 }
 0x214   :  { %717 = vrot.lane.b32.xlu0 %v2782_v27, %s2490_s13  ;;  %v601_v27 = vrot.slane %v2863_v56, 7 }
 0x216   :  { %723 = vrot.lane.b32.xlu1 %v2790_v32, %s2490_s13  ;;  %v2976_v32 = vrot.slane %v592_v26, 2  ;;  %v2981_v43 = vrot.slane %v601_v27, 2  ;;  %v899_v26 = vld [vmem:[%s3729_s5 + $0x3b0] sm:$0xff]  ;;  %v900_v27 = vld [vmem:[%s3729_s5 + $0x3b8] sm:$0xff] }
 0x218   :  { %545 = vrot.lane.b32.xlu0 %v544_v37, %s2490_s13 }
 0x21a   :  { %554 = vrot.lane.b32.xlu1 %v2956_v39, %s2490_s13 }
 0x21c   :  { %570 = vrot.lane.b32.xlu0 %v569_v17, %s2490_s13 }
 0x21e   :  { %579 = vrot.lane.b32.xlu1 %v2962_v41, %s2490_s13 }
 0x220   :  { %729 = vrot.lane.b32.xlu0 %v2831_v44, %s2490_s13  ;;  %v2986_v44 = vrot.slane %v617_v42, 2 }
 0x222   :  { %735 = vrot.lane.b32.xlu1 %v2863_v56, %s2490_s13 }
 0x224   :  { %741 = vrot.lane.b32.xlu0 %v2834_v45, %s2490_s13 }
 0x226   :  { %747 = vrot.lane.b32.xlu1 %v2867_v58, %s2490_s13 }
 0x228   :  { %594 = vrot.lane.b32.xlu0 %v2976_v32, %s2490_s13 }
 0x22a   :  { %603 = vrot.lane.b32.xlu1 %v2981_v43, %s2490_s13 }
 0x22c   :  { %619 = vrot.lane.b32.xlu0 %v2986_v44, %s2490_s13 }
 0x22e   :  { %628 = vrot.lane.b32.xlu1 %v2990_v47, %s2490_s13 }
 0x270   :  { %v682_v45 = vpop.permute.xlu1 %681 }
 0x271   :  { %684 = vst.msk [vmem:[#allocation2 + $0x1] sm:$0x1] %vm483_vm5, %v682_v45 }
 0x272   :  { %686 = vst.msk [vmem:[#allocation2 + $0x1] sm:$0x1] %vm498_vm6, %v2858_v54  ;;  %v688_v48 = vpop.permute.xlu0 %687 }
 0x273   :  { %690 = vst.msk [vmem:[#allocation2 + $0x3] sm:$0x1] %vm483_vm5, %v688_v48 }
 0x274   :  { %692 = vst.msk [vmem:[#allocation2 + $0x3] sm:$0x1] %vm498_vm6, %v2885_v1  ;;  %v694_v49 = vpop.permute.xlu1 %693  ;;  %v878_v1 = vld [vmem:[%s3729_s5 + $0x308] sm:$0xff] }
 0x275   :  { %696 = vst.msk [vmem:[#allocation2 + $0x5] sm:$0x1] %vm483_vm5, %v694_v49  ;;  %v2218_v14 = vpack.c.bf16 %v878_v1, %v877_v15  ;;  %v851_v49 = vld [vmem:[%s3729_s5 + $0x230] sm:$0xff]  ;;  %v853_v15 = vld [vmem:[%s3729_s5 + $0x240] sm:$0xff]  ;;  %v854_v1 = vld [vmem:[%s3729_s5 + $0x248] sm:$0xff] }
 0x276   :  { %698 = vst.msk [vmem:[#allocation2 + $0x5] sm:$0x1] %vm498_vm6, %v2906_v7  ;;  %v700_v50 = vpop.permute.xlu0 %699  ;;  %v848_v7 = vld [vmem:[%s3729_s5 + $0x218] sm:$0xff] }
 0x277   :  { %702 = vst.msk [vmem:[#allocation2 + $0x7] sm:$0x1] %vm483_vm5, %v700_v50  ;;  %v2190_v22 = vpack.c.bf16 %v848_v7, %v847_v12  ;;  %v852_v50 = vld [vmem:[%s3729_s5 + $0x238] sm:$0xff]  ;;  %v903_v7 = vld [vmem:[%s3729_s5 + $0x3d0] sm:$0xff] }
 0x278   :  { %704 = vst.msk [vmem:[#allocation2 + $0x7] sm:$0x1] %vm498_vm6, %v2922_v20  ;;  %v496_v51 = vpop.permute.xlu1 %495  ;;  %v880_v20 = vld [vmem:[%s3729_s5 + $0x318] sm:$0xff]  ;;  %v2198_v60 = vpack.c.bf16 %v852_v50, %v851_v49 }
 0x279   :  { %499 = vst.msk [vmem:[#allocation2] sm:$0x1] %vm498_vm6, %v496_v51  ;;  %v2222_v33 = vpack.c.bf16 %v880_v20, %v879_v19  ;;  %v856_v19 = vld [vmem:[%s3729_s5 + $0x258] sm:$0xff] }
 0x27a   :  { %v506_v52 = vpop.permute.xlu0 %505 }
 0x27b   :  { %508 = vst.msk [vmem:[#allocation2 + $0x2] sm:$0x1] %vm498_vm6, %v506_v52  ;;  %v869_v52 = vld [vmem:[%s3729_s5 + $0x2c0] sm:$0xff] }
 0x27c   :  { %v522_v53 = vpop.permute.xlu1 %521 }
 0x27d   :  { %524 = vst.msk [vmem:[#allocation2 + $0x4] sm:$0x1] %vm498_vm6, %v522_v53  ;;  %v870_v53 = vld [vmem:[%s3729_s5 + $0x2c8] sm:$0xff] }
 0x27e   :  { %v531_v54 = vpop.permute.xlu0 %530  ;;  %v2200_v0 = vpack.c.bf16 %v870_v53, %v869_v52  ;;  %v908_v52 = vld [vmem:[%s3729_s5 + $0x3f8] sm:$0xff] }
 0x27f   :  { %533 = vst.msk [vmem:[#allocation2 + $0x6] sm:$0x1] %vm498_vm6, %v531_v54 }
 0x282   :  { %v706_v55 = vpop.permute.xlu0 %705 }
 0x283   :  { %708 = vst.msk [vmem:[#allocation2 + $0x9] sm:$0x1] %vm483_vm5, %v706_v55  ;;  %v2228_v55 = vpack.c.bf16 %v900_v27, %v899_v26  ;;  %v875_v26 = vld [vmem:[%s3729_s5 + $0x2f0] sm:$0xff]  ;;  %v876_v27 = vld [vmem:[%s3729_s5 + $0x2f8] sm:$0xff] }
 0x284   :  { %710 = vst.msk [vmem:[#allocation2 + $0x9] sm:$0x1] %vm498_vm6, %v544_v37  ;;  %v881_v37 = vld [vmem:[%s3729_s5 + $0x320] sm:$0xff]  ;;  %v2212_v53 = vpack.c.bf16 %v876_v27, %v875_v26  ;;  %v932_v26 = vld [vmem:[%s3729_s5 + $0x4b8] sm:$0xff] }
 0x285   :  { %v2226_v51 = vpack.c.bf16 %v882_v38, %v881_v37  ;;  %v857_v38 = vld [vmem:[%s3729_s5 + $0x260] sm:$0xff] }
 0x286   :  { %v718_v56 = vpop.permute.xlu0 %717  ;;  %v777_v58 = vld [vmem:[#allocation2] sm:$0xff] }
 0x287   :  { %720 = vst.msk [vmem:[#allocation2 + $0xd] sm:$0x1] %vm483_vm5, %v718_v56  ;;  %v1055_v61 = vrot.slane %v777_v58, %v2729_v57  ;;  %v1048_v62 = vcombine.high %v777_v58, %v777_v58  ;;  %v883_v56 = vld [vmem:[%s3729_s5 + $0x330] sm:$0xff]  ;;  %v884_v58 = vld [vmem:[%s3729_s5 + $0x338] sm:$0xff] }
 0x288   :  { %722 = vst.msk [vmem:[#allocation2 + $0xd] sm:$0x1] %vm498_vm6, %v569_v17  ;;  %v2194_v17 = vpack.c.bf16 %v850_v31, %v849_v30 }
 0x289   :  { %v1063_v2 = vcombine.high %v1055_v61, %v1055_v61  ;;  %v1062_v5 = vrot.slane %v1048_v62, %v2729_v57 }
 0x28a   :  { %v546_v10 = vpop.permute.xlu0 %545 }
 0x28b   :  { %548 = vst.msk [vmem:[#allocation2 + $0x8] sm:$0x1] %vm498_vm6, %v546_v10  ;;  %1196 = vmatprep.mubr.f32.mxu1 %v1063_v2  ;;  %v1064_v13 = vcombine.high %v1062_v5, %v1062_v5  ;;  %v886_v10 = vld [vmem:[%s3729_s5 + $0x348] sm:$0xff] }
 0x28c   :  { %1197 = vmatmul.mubr.f32.vlgmr.msra.gmra.mrb[4].mxu1 %v1055_v61  ;;  %v902_v61 = vld [vmem:[%s3729_s5 + $0x3c8] sm:$0xff] }
 0x28d   :  { %2187 = vmatpush3.bf16.msra.mxu1 %v2186_v4  ;;  %v473_v21 = vpop.permute.xlu1 %472  ;;  %1266 = vmatprep.mubr.f32.mxu0 %v1064_v13  ;;  %v2230_v4 = vpack.c.bf16 %v884_v58, %v883_v56  ;;  %v904_v13 = vld [vmem:[%s3729_s5 + $0x3d8] sm:$0xff]  ;;  %v925_v56 = vld [vmem:[%s3729_s5 + $0x480] sm:$0xff]  ;;  %v926_v58 = vld [vmem:[%s3729_s5 + $0x488] sm:$0xff] }
 0x28e   :  { %v478_v25 = vadd.f32 %v2744_v3, %v473_v21  ;;  %v571_v28 = vpop.permute.xlu0 %570  ;;  %1267 = vmatmul.mubr.f32.vlgmr.msra.gmra.mrb[4].mxu0 %v1062_v5  ;;  %2189 = vmatprep.subr.bf16.mxu1 %v2188_v11  ;;  %v867_v3 = vld [vmem:[%s3729_s5 + $0x2b0] sm:$0xff]  ;;  %v2234_v21 = vpack.c.bf16 %v886_v10, %v885_v9  ;;  %v928_v9 = vld [vmem:[%s3729_s5 + $0x498] sm:$0xff] }
 0x28f   :  { %573 = vst.msk [vmem:[#allocation2 + $0xc] sm:$0x1] %vm498_vm6, %v571_v28  ;;  %2219 = vmatpush3.bf16.msra.mxu0 %v2218_v14  ;;  %v2196_v48 = vpack.c.bf16 %v868_v34, %v867_v3  ;;  %v871_v5 = vld [vmem:[%s3729_s5 + $0x2d0] sm:$0xff]  ;;  %v905_v3 = vld [vmem:[%s3729_s5 + $0x3e0] sm:$0xff]  ;;  %v906_v34 = vld [vmem:[%s3729_s5 + $0x3e8] sm:$0xff] }
 0x290   :  { %v482_v35 = vmax.f32 %v478_v25, 0.0  ;;  %2221 = vmatprep.subr.bf16.mxu0 %v2220_v8  ;;  %v2204_v18 = vpack.c.bf16 %v872_v6, %v871_v5  ;;  %v855_v8 = vld [vmem:[%s3729_s5 + $0x250] sm:$0xff]  ;;  %v2236_v25 = vpack.c.bf16 %v904_v13, %v903_v7  ;;  %v958_v5 = vld [vmem:[%s3729_s5 + $0x588] sm:$0xff] }
 0x291   :  { %2191 = vmatpush3.bf16.msra.mxu1 %v2190_v22  ;;  %v712_v40 = vpop.permute.xlu1 %711  ;;  %v873_v22 = vld [vmem:[%s3729_s5 + $0x2e0] sm:$0xff]  ;;  %v887_v28 = vld [vmem:[%s3729_s5 + $0x350] sm:$0xff] }
 0x292   :  { %v656_v42 = vcombine.high %v482_v35, %v482_v35  ;;  %632 = vst.msk [vmem:[#allocation2 + $0x18] sm:$0x1] %vm483_vm5, %v482_v35  ;;  %714 = vst.msk [vmem:[#allocation2 + $0xb] sm:$0x1] %vm483_vm5, %v712_v40  ;;  %v730_v46 = vpop.permute.xlu0 %729  ;;  %2193 = vmatprep.subr.bf16.mxu1 %v2192_v29  ;;  %v640_v45 = vrot.slane %v482_v35, %v2729_v57  ;;  %v888_v29 = vld [vmem:[%s3729_s5 + $0x358] sm:$0xff]  ;;  %v2208_v37 = vpack.c.bf16 %v874_v23, %v873_v22  ;;  %v858_v40 = vld [vmem:[%s3729_s5 + $0x268] sm:$0xff] }
 0x293   :  { %716 = vst.msk [vmem:[#allocation2 + $0xb] sm:$0x1] %vm498_vm6, %v2956_v39  ;;  %2223 = vmatpush3.bf16.msra.mxu0 %v2222_v33  ;;  %v2206_v33 = vpack.c.bf16 %v856_v19, %v855_v8  ;;  %v2210_v50 = vpack.c.bf16 %v858_v40, %v857_v38  ;;  %v929_v23 = vld [vmem:[%s3729_s5 + $0x4a0] sm:$0xff]  ;;  %v914_v38 = vld [vmem:[%s3729_s5 + $0x428] sm:$0xff] }
 0x294   :  { %732 = vst.msk [vmem:[#allocation2 + $0x11] sm:$0x1] %vm483_vm5, %v730_v46  ;;  %753 = vrot.lane.b32.xlu0 %v640_v45, %s2490_s13  ;;  %2225 = vmatprep.subr.bf16.mxu0 %v2224_v36  ;;  %v647_v54 = vcombine.high %v640_v45, %v640_v45  ;;  %v3113_v39 = vrot.slane %v656_v42, %v2729_v57  ;;  %v641_v2 = vrot.slane %v640_v45, 7  ;;  %v889_v45 = vld [vmem:[%s3729_s5 + $0x360] sm:$0xff] }
 0x295   :  { %734 = vst.msk [vmem:[#allocation2 + $0x11] sm:$0x1] %vm498_vm6, %v2976_v32  ;;  %2195 = vmatpush3.bf16.msra.mxu1 %v2194_v17  ;;  %v724_v59 = vpop.permute.xlu1 %723  ;;  %v901_v32 = vld [vmem:[%s3729_s5 + $0x3c0] sm:$0xff]  ;;  %v2238_v17 = vpack.c.bf16 %v888_v29, %v887_v28  ;;  %v2240_v46 = vpack.c.bf16 %v906_v34, %v905_v3  ;;  %v943_v29 = vld [vmem:[%s3729_s5 + $0x510] sm:$0xff]  ;;  %v962_v34 = vld [vmem:[%s3729_s5 + $0x5a8] sm:$0xff] }
 0x296   :  { %726 = vst.msk [vmem:[#allocation2 + $0xf] sm:$0x1] %vm483_vm5, %v724_v59  ;;  %v742_v62 = vpop.permute.xlu0 %741  ;;  %759 = vrot.lane.b32.xlu1 %v647_v54, %s2490_s13  ;;  %649 = vst.msk [vmem:[#allocation2 + $0x1a] sm:$0x1] %vm483_vm5, %v647_v54  ;;  %2197 = vmatprep.subr.bf16.mxu1 %v2196_v48  ;;  %v3134_v63 = vcombine.high %v3113_v39, %v3113_v39  ;;  %v650_v11 = vrot.slane %v647_v54, 7  ;;  %v3172_v16 = vrot.slane %v641_v2, 2 }
 0x297   :  { %665 = vst.msk [vmem:[#allocation2 + $0x1c] sm:$0x1] %vm483_vm5, %v3113_v39  ;;  %2227 = vmatpush3.bf16.msra.mxu0 %v2226_v51  ;;  %744 = vst.msk [vmem:[#allocation2 + $0x15] sm:$0x1] %vm483_vm5, %v742_v62  ;;  %v666_v20 = vrot.slane %v3113_v39, 7  ;;  %v890_v48 = vld [vmem:[%s3729_s5 + $0x368] sm:$0xff] }
 0x298   :  { %728 = vst.msk [vmem:[#allocation2 + $0xf] sm:$0x1] %vm498_vm6, %v2962_v41  ;;  %746 = vst.msk [vmem:[#allocation2 + $0x15] sm:$0x1] %vm498_vm6, %v2986_v44  ;;  %765 = vrot.lane.b32.xlu0 %v3113_v39, %s2490_s13  ;;  %2229 = vmatprep.subr.bf16.mxu0 %v2228_v55  ;;  %v2232_v41 = vpack.c.bf16 %v902_v61, %v901_v32  ;;  %v2202_v44 = vpack.c.bf16 %v854_v1, %v853_v15  ;;  %v3190_v24 = vrot.slane %v650_v11, 2  ;;  %v907_v51 = vld [vmem:[%s3729_s5 + $0x3f0] sm:$0xff] }
 0x299   :  { %674 = vst.msk [vmem:[#allocation2 + $0x1e] sm:$0x1] %vm483_vm5, %v3134_v63  ;;  %2199 = vmatpush3.bf16.msra.mxu1 %v2198_v60  ;;  %v555_v12 = vpop.permute.xlu1 %554  ;;  %v675_v30 = vrot.slane %v3134_v63, 7  ;;  %v3208_v36 = vrot.slane %v666_v20, 2  ;;  %v859_v54 = vld [vmem:[%s3729_s5 + $0x270] sm:$0xff]  ;;  %v860_v39 = vld [vmem:[%s3729_s5 + $0x278] sm:$0xff]  ;;  %v2242_v55 = vpack.c.bf16 %v890_v48, %v889_v45  ;;  %v2244_v59 = vpack.c.bf16 %v908_v52, %v907_v51 }
 0x29a   :  { %557 = vst.msk [vmem:[#allocation2 + $0xa] sm:$0x1] %vm498_vm6, %v555_v12  ;;  %771 = vrot.lane.b32.xlu1 %v3134_v63, %s2490_s13  ;;  %v595_v14 = vpop.permute.xlu0 %594  ;;  %2201 = vmatprep.subr.bf16.mxu1 %v2200_v0  ;;  %v891_v60 = vld [vmem:[%s3729_s5 + $0x370] sm:$0xff]  ;;  %v2214_v61 = vpack.c.bf16 %v860_v39, %v859_v54  ;;  %v909_v63 = vld [vmem:[%s3729_s5 + $0x400] sm:$0xff]  ;;  %v2248_v15 = vpack.c.bf16 %v926_v58, %v925_v56  ;;  %v910_v2 = vld [vmem:[%s3729_s5 + $0x408] sm:$0xff] }
 0x29b   :  { %2231 = vmatpush3.bf16.msra.mxu0 %v2230_v4  ;;  %597 = vst.msk [vmem:[#allocation2 + $0x10] sm:$0x1] %vm498_vm6, %v595_v14  ;;  %v3225_v42 = vrot.slane %v675_v30, 2  ;;  %v957_v4 = vld [vmem:[%s3729_s5 + $0x580] sm:$0xff]  ;;  %v2250_v7 = vpack.c.bf16 %v910_v2, %v909_v63  ;;  %v959_v14 = vld [vmem:[%s3729_s5 + $0x590] sm:$0xff]  ;;  %v944_v30 = vld [vmem:[%s3729_s5 + $0x518] sm:$0xff] }
 0x29c   :  { %643 = vrot.lane.b32.xlu0 %v3172_v16, %s2490_s13  ;;  %2233 = vmatprep.subr.bf16.mxu0 %v2232_v41  ;;  %v927_v41 = vld [vmem:[%s3729_s5 + $0x490] sm:$0xff]  ;;  %v941_v12 = vld [vmem:[%s3729_s5 + $0x500] sm:$0xff]  ;;  %v2280_v13 = vpack.c.bf16 %v958_v5, %v957_v4  ;;  %v2286_v40 = vpack.c.bf16 %v944_v30, %v943_v29  ;;  %v946_v45 = vld [vmem:[%s3729_s5 + $0x528] sm:$0xff] }
 0x29d   :  { %2203 = vmatpush3.bf16.msra.mxu1 %v2202_v44  ;;  %v580_v31 = vpop.permute.xlu1 %579  ;;  %v2252_v19 = vpack.c.bf16 %v928_v9, %v927_v41  ;;  %v911_v20 = vld [vmem:[%s3729_s5 + $0x410] sm:$0xff]  ;;  %v961_v3 = vld [vmem:[%s3729_s5 + $0x5a0] sm:$0xff]  ;;  %v936_v5 = vld [vmem:[%s3729_s5 + $0x4d8] sm:$0xff] }
 0x29e   :  { %582 = vst.msk [vmem:[#allocation2 + $0xe] sm:$0x1] %vm498_vm6, %v580_v31  ;;  %652 = vrot.lane.b32.xlu1 %v3190_v24, %s2490_s13  ;;  %v620_v35 = vpop.permute.xlu0 %619  ;;  %2205 = vmatprep.subr.bf16.mxu1 %v2204_v18  ;;  %v960_v18 = vld [vmem:[%s3729_s5 + $0x598] sm:$0xff]  ;;  %v2288_v27 = vpack.c.bf16 %v962_v34, %v961_v3  ;;  %v915_v52 = vld [vmem:[%s3729_s5 + $0x430] sm:$0xff]  ;;  %v933_v39 = vld [vmem:[%s3729_s5 + $0x4c0] sm:$0xff] }
 0x29f   :  { %2235 = vmatpush3.bf16.msra.mxu0 %v2234_v21  ;;  %622 = vst.msk [vmem:[#allocation2 + $0x14] sm:$0x1] %vm498_vm6, %v620_v35  ;;  %v912_v21 = vld [vmem:[%s3729_s5 + $0x418] sm:$0xff]  ;;  %v2284_v28 = vpack.c.bf16 %v960_v18, %v959_v14  ;;  %v947_v58 = vld [vmem:[%s3729_s5 + $0x530] sm:$0xff]  ;;  %v970_v29 = vld [vmem:[%s3729_s5 + $0x5e8] sm:$0xff] }
 0x2a0   :  { %668 = vrot.lane.b32.xlu0 %v3208_v36, %s2490_s13  ;;  %2237 = vmatprep.subr.bf16.mxu0 %v2236_v25  ;;  %v930_v25 = vld [vmem:[%s3729_s5 + $0x4a8] sm:$0xff]  ;;  %v935_v4 = vld [vmem:[%s3729_s5 + $0x4d0] sm:$0xff]  ;;  %v920_v18 = vld [vmem:[%s3729_s5 + $0x458] sm:$0xff] }
 0x2a1   :  { %2207 = vmatpush3.bf16.msra.mxu1 %v2206_v33  ;;  %v736_v49 = vpop.permute.xlu1 %735  ;;  %v2254_v33 = vpack.c.bf16 %v912_v21, %v911_v20  ;;  %v2256_v35 = vpack.c.bf16 %v930_v25, %v929_v23  ;;  %v919_v14 = vld [vmem:[%s3729_s5 + $0x450] sm:$0xff]  ;;  %v938_v20 = vld [vmem:[%s3729_s5 + $0x4e8] sm:$0xff]  ;;  %v952_v23 = vld [vmem:[%s3729_s5 + $0x558] sm:$0xff] }
 0x2a2   :  { %738 = vst.msk [vmem:[#allocation2 + $0x13] sm:$0x1] %vm483_vm5, %v736_v49  ;;  %677 = vrot.lane.b32.xlu1 %v3225_v42, %s2490_s13  ;;  %2209 = vmatprep.subr.bf16.mxu1 %v2208_v37  ;;  %v913_v37 = vld [vmem:[%s3729_s5 + $0x420] sm:$0xff]  ;;  %v963_v49 = vld [vmem:[%s3729_s5 + $0x5b0] sm:$0xff]  ;;  %v2270_v25 = vpack.c.bf16 %v920_v18, %v919_v14 }
 0x2a3   :  { %740 = vst.msk [vmem:[#allocation2 + $0x13] sm:$0x1] %vm498_vm6, %v2981_v43  ;;  %2239 = vmatpush3.bf16.msra.mxu0 %v2238_v17  ;;  %v892_v43 = vld [vmem:[%s3729_s5 + $0x378] sm:$0xff]  ;;  %v931_v17 = vld [vmem:[%s3729_s5 + $0x4b0] sm:$0xff]  ;;  %v2258_v48 = vpack.c.bf16 %v914_v38, %v913_v37  ;;  %v953_v38 = vld [vmem:[%s3729_s5 + $0x560] sm:$0xff] }
 0x2a4   :  { %2241 = vmatprep.subr.bf16.mxu0 %v2240_v46  ;;  %v2246_v6 = vpack.c.bf16 %v892_v43, %v891_v60  ;;  %v945_v46 = vld [vmem:[%s3729_s5 + $0x520] sm:$0xff]  ;;  %v2260_v51 = vpack.c.bf16 %v932_v26, %v931_v17  ;;  %v939_v34 = vld [vmem:[%s3729_s5 + $0x4f0] sm:$0xff] }
 0x2a5   :  { %2211 = vmatpush3.bf16.msra.mxu1 %v2210_v50  ;;  %v748_v32 = vpop.permute.xlu1 %747  ;;  %v778_v62 = vld [vmem:[#allocation2 + $0x8] sm:$0xff]  ;;  %v964_v50 = vld [vmem:[%s3729_s5 + $0x5b8] sm:$0xff]  ;;  %v2290_v54 = vpack.c.bf16 %v946_v45, %v945_v46  ;;  %v971_v26 = vld [vmem:[%s3729_s5 + $0x5f0] sm:$0xff] }
 0x2a6   :  { %750 = vst.msk [vmem:[#allocation2 + $0x17] sm:$0x1] %vm483_vm5, %v748_v32  ;;  %2213 = vmatprep.subr.bf16.mxu1 %v2212_v53  ;;  %v1072_v0 = vrot.slane %v778_v62, %v2729_v57  ;;  %v1065_v1 = vcombine.high %v778_v62, %v778_v62  ;;  %v916_v53 = vld [vmem:[%s3729_s5 + $0x438] sm:$0xff]  ;;  %v2292_v56 = vpack.c.bf16 %v964_v50, %v963_v49  ;;  %v965_v32 = vld [vmem:[%s3729_s5 + $0x5c0] sm:$0xff]  ;;  %v923_v45 = vld [vmem:[%s3729_s5 + $0x470] sm:$0xff] }
 0x2a7   :  { %752 = vst.msk [vmem:[#allocation2 + $0x17] sm:$0x1] %vm498_vm6, %v2990_v47  ;;  %2243 = vmatpush3.bf16.msra.mxu0 %v2242_v55  ;;  %v942_v47 = vld [vmem:[%s3729_s5 + $0x508] sm:$0xff]  ;;  %v2262_v60 = vpack.c.bf16 %v916_v53, %v915_v52  ;;  %v989_v50 = vld [vmem:[%s3729_s5 + $0x680] sm:$0xff]  ;;  %v955_v53 = vld [vmem:[%s3729_s5 + $0x570] sm:$0xff] }
 0x2a8   :  { %2245 = vmatprep.subr.bf16.mxu0 %v2244_v59  ;;  %v1080_v10 = vcombine.high %v1072_v0, %v1072_v0  ;;  %v1079_v11 = vrot.slane %v1065_v1, %v2729_v57  ;;  %v2282_v22 = vpack.c.bf16 %v942_v47, %v941_v12  ;;  %v934_v55 = vld [vmem:[%s3729_s5 + $0x4c8] sm:$0xff]  ;;  %v948_v59 = vld [vmem:[%s3729_s5 + $0x538] sm:$0xff]  ;;  %v967_v47 = vld [vmem:[%s3729_s5 + $0x5d0] sm:$0xff] }
 0x2a9   :  { %2215 = vmatpush3.bf16.msra.mxu1 %v2214_v61  ;;  %v604_v44 = vpop.permute.xlu1 %603  ;;  %v966_v61 = vld [vmem:[%s3729_s5 + $0x5c8] sm:$0xff]  ;;  %v2264_v63 = vpack.c.bf16 %v934_v55, %v933_v39  ;;  %v2294_v2 = vpack.c.bf16 %v948_v59, %v947_v58  ;;  %v1021_v55 = vld [vmem:[%s3729_s5 + $0x780] sm:$0xff] }
 0x2aa   :  { %606 = vst.msk [vmem:[#allocation2 + $0x12] sm:$0x1] %vm498_vm6, %v604_v44  ;;  %1336 = vmatprep.mubr.f32.mxu1 %v1080_v10  ;;  %2249 = vmatprep.subr.bf16.mxu1 %v2248_v15  ;;  %v1081_v8 = vcombine.high %v1079_v11, %v1079_v11  ;;  %v918_v15 = vld [vmem:[%s3729_s5 + $0x448] sm:$0xff]  ;;  %v2296_v9 = vpack.c.bf16 %v966_v61, %v965_v32  ;;  %v949_v10 = vld [vmem:[%s3729_s5 + $0x540] sm:$0xff]  ;;  %v968_v44 = vld [vmem:[%s3729_s5 + $0x5d8] sm:$0xff] }
 0x2ab   :  { %2247 = vmatpush3.bf16.msra.mxu0 %v2246_v6  ;;  %v2300_v21 = vpack.c.bf16 %v968_v44, %v967_v47  ;;  %v973_v59 = vld [vmem:[%s3729_s5 + $0x600] sm:$0xff]  ;;  %v991_v32 = vld [vmem:[%s3729_s5 + $0x690] sm:$0xff]  ;;  %v992_v61 = vld [vmem:[%s3729_s5 + $0x698] sm:$0xff] }
 0x2ac   :  { %1337 = vmatmul.mubr.f32.vlgmr.msra.gmra.mrb[6].mxu1 %v1072_v0  ;;  %1406 = vmatprep.mubr.f32.mxu0 %v1081_v8  ;;  %v917_v0 = vld [vmem:[%s3729_s5 + $0x440] sm:$0xff]  ;;  %v1007_v44 = vld [vmem:[%s3729_s5 + $0x710] sm:$0xff] }
 0x2ad   :  { %2251 = vmatpush3.bf16.msra.mxu1 %v2250_v7  ;;  %2281 = vmatprep.subr.bf16.mxu0 %v2280_v13  ;;  %v629_v31 = vpop.permute.xlu1 %628  ;;  %v2266_v12 = vpack.c.bf16 %v918_v15, %v917_v0  ;;  %v2268_v13 = vpack.c.bf16 %v936_v5, %v935_v4  ;;  %v1005_v0 = vld [vmem:[%s3729_s5 + $0x700] sm:$0xff]  ;;  %v1006_v15 = vld [vmem:[%s3729_s5 + $0x708] sm:$0xff]  ;;  %v1024_v4 = vld [vmem:[%s3729_s5 + $0x798] sm:$0xff]  ;;  %v2316_v5 = vpack.c.bf16 %v992_v61, %v991_v32 }
 0x2ae   :  { %1407 = vmatmul.mubr.f32.vlgmr.msra.gmra.mrb[6].mxu0 %v1079_v11  ;;  %631 = vst.msk [vmem:[#allocation2 + $0x16] sm:$0x1] %vm498_vm6, %v629_v31  ;;  %2253 = vmatprep.subr.bf16.mxu1 %v2252_v19  ;;  %v950_v11 = vld [vmem:[%s3729_s5 + $0x548] sm:$0xff]  ;;  %v937_v19 = vld [vmem:[%s3729_s5 + $0x4e0] sm:$0xff] }
 0x2af   :  { %2283 = vmatpush3.bf16.msra.mxu0 %v2282_v22  ;;  %v2298_v8 = vpack.c.bf16 %v950_v11, %v949_v10  ;;  %v951_v22 = vld [vmem:[%s3729_s5 + $0x550] sm:$0xff]  ;;  %v2272_v30 = vpack.c.bf16 %v938_v20, %v937_v19  ;;  %v921_v31 = vld [vmem:[%s3729_s5 + $0x460] sm:$0xff]  ;;  %v2346_v10 = vpack.c.bf16 %v1006_v15, %v1005_v0  ;;  %v978_v19 = vld [vmem:[%s3729_s5 + $0x628] sm:$0xff] }
 0x2b0   :  { %2285 = vmatprep.subr.bf16.mxu0 %v2284_v28  ;;  %v969_v28 = vld [vmem:[%s3729_s5 + $0x5e0] sm:$0xff]  ;;  %v2302_v3 = vpack.c.bf16 %v952_v23, %v951_v22  ;;  %v1015_v15 = vld [vmem:[%s3729_s5 + $0x750] sm:$0xff] }
 0x2b1   :  { %2255 = vmatpush3.bf16.msra.mxu1 %v2254_v33  ;;  %v922_v33 = vld [vmem:[%s3729_s5 + $0x468] sm:$0xff]  ;;  %v2304_v37 = vpack.c.bf16 %v970_v29, %v969_v28  ;;  %v993_v11 = vld [vmem:[%s3729_s5 + $0x6a0] sm:$0xff]  ;;  %v1027_v29 = vld [vmem:[%s3729_s5 + $0x7b0] sm:$0xff] }
 0x2b2   :  { %2257 = vmatprep.subr.bf16.mxu1 %v2256_v35  ;;  %v940_v35 = vld [vmem:[%s3729_s5 + $0x4f8] sm:$0xff]  ;;  %v2274_v17 = vpack.c.bf16 %v922_v33, %v921_v31  ;;  %v1025_v14 = vld [vmem:[%s3729_s5 + $0x7a0] sm:$0xff]  ;;  %v979_v33 = vld [vmem:[%s3729_s5 + $0x630] sm:$0xff] }
 0x2b3   :  { %2287 = vmatpush3.bf16.msra.mxu0 %v2286_v40  ;;  %v954_v40 = vld [vmem:[%s3729_s5 + $0x568] sm:$0xff]  ;;  %v2276_v46 = vpack.c.bf16 %v940_v35, %v939_v34  ;;  %v1009_v23 = vld [vmem:[%s3729_s5 + $0x720] sm:$0xff] }
 0x2b4   :  { %2289 = vmatprep.subr.bf16.mxu0 %v2288_v27  ;;  %v972_v27 = vld [vmem:[%s3729_s5 + $0x5f8] sm:$0xff]  ;;  %v2306_v49 = vpack.c.bf16 %v954_v40, %v953_v38  ;;  %v997_v35 = vld [vmem:[%s3729_s5 + $0x6c0] sm:$0xff]  ;;  %v1011_v40 = vld [vmem:[%s3729_s5 + $0x730] sm:$0xff] }
 0x2b5   :  { %2259 = vmatpush3.bf16.msra.mxu1 %v2258_v48  ;;  %v779_v43 = vld [vmem:[#allocation2 + $0x10] sm:$0xff]  ;;  %v924_v48 = vld [vmem:[%s3729_s5 + $0x478] sm:$0xff]  ;;  %v2308_v52 = vpack.c.bf16 %v972_v27, %v971_v26  ;;  %v1029_v27 = vld [vmem:[%s3729_s5 + $0x7c0] sm:$0xff] }
 0x2b6   :  { %2261 = vmatprep.subr.bf16.mxu1 %v2260_v51  ;;  %v3372_v62 = vrot.slane %v779_v43, %v2729_v57  ;;  %v1082_v1 = vcombine.high %v779_v43, %v779_v43  ;;  %v990_v51 = vld [vmem:[%s3729_s5 + $0x688] sm:$0xff]  ;;  %v2278_v39 = vpack.c.bf16 %v924_v48, %v923_v45  ;;  %v981_v48 = vld [vmem:[%s3729_s5 + $0x640] sm:$0xff] }
 0x2b7   :  { %2291 = vmatpush3.bf16.msra.mxu0 %v2290_v54  ;;  %v956_v54 = vld [vmem:[%s3729_s5 + $0x578] sm:$0xff]  ;;  %v2312_v58 = vpack.c.bf16 %v990_v51, %v989_v50  ;;  %v999_v51 = vld [vmem:[%s3729_s5 + $0x6d0] sm:$0xff]  ;;  %v1001_v61 = vld [vmem:[%s3729_s5 + $0x6e0] sm:$0xff] }
 0x2b8   :  { %2293 = vmatprep.subr.bf16.mxu0 %v2292_v56  ;;  %v1097_v6 = vcombine.high %v3372_v62, %v3372_v62  ;;  %v3389_v41 = vrot.slane %v1082_v1, %v2729_v57  ;;  %v1022_v56 = vld [vmem:[%s3729_s5 + $0x788] sm:$0xff]  ;;  %v2310_v43 = vpack.c.bf16 %v956_v54, %v955_v53  ;;  %v1013_v54 = vld [vmem:[%s3729_s5 + $0x740] sm:$0xff] }
 0x2b9   :  { %2263 = vmatpush3.bf16.msra.mxu1 %v2262_v60  ;;  %v974_v60 = vld [vmem:[%s3729_s5 + $0x608] sm:$0xff] }
 0x2ba   :  { %1476 = vmatprep.mubr.f32.mxu1 %v1097_v6  ;;  %2265 = vmatprep.subr.bf16.mxu1 %v2264_v63  ;;  %v1098_v7 = vcombine.high %v3389_v41, %v3389_v41  ;;  %v2344_v63 = vpack.c.bf16 %v1022_v56, %v1021_v55  ;;  %v2314_v1 = vpack.c.bf16 %v974_v60, %v973_v59  ;;  %v975_v6 = vld [vmem:[%s3729_s5 + $0x610] sm:$0xff] }
 0x2bb   :  { %2295 = vmatpush3.bf16.msra.mxu0 %v2294_v2  ;;  %v1023_v2 = vld [vmem:[%s3729_s5 + $0x790] sm:$0xff] }
 0x2bc   :  { %1546 = vmatprep.mubr.f32.mxu0 %v1098_v7  ;;  %2297 = vmatprep.subr.bf16.mxu0 %v2296_v9  ;;  %v976_v9 = vld [vmem:[%s3729_s5 + $0x618] sm:$0xff]  ;;  %v2348_v47 = vpack.c.bf16 %v1024_v4, %v1023_v2  ;;  %v1031_v56 = vld [vmem:[%s3729_s5 + $0x7d0] sm:$0xff]  ;;  %v1033_v4 = vld [vmem:[%s3729_s5 + $0x7e0] sm:$0xff] }
 0x2bd   :  { %2267 = vmatpush3.bf16.msra.mxu1 %v2266_v12  ;;  %v994_v12 = vld [vmem:[%s3729_s5 + $0x6a8] sm:$0xff]  ;;  %v1008_v7 = vld [vmem:[%s3729_s5 + $0x718] sm:$0xff]  ;;  %v983_v60 = vld [vmem:[%s3729_s5 + $0x650] sm:$0xff] }
 0x2be   :  { %2269 = vmatprep.subr.bf16.mxu1 %v2268_v13  ;;  %v2318_v13 = vpack.c.bf16 %v976_v9, %v975_v6  ;;  %v2320_v18 = vpack.c.bf16 %v994_v12, %v993_v11  ;;  %v2350_v20 = vpack.c.bf16 %v1008_v7, %v1007_v44  ;;  %v985_v9 = vld [vmem:[%s3729_s5 + $0x660] sm:$0xff]  ;;  %v1003_v12 = vld [vmem:[%s3729_s5 + $0x6f0] sm:$0xff] }
 0x2bf   :  { %2299 = vmatpush3.bf16.msra.mxu0 %v2298_v8  ;;  %v977_v8 = vld [vmem:[%s3729_s5 + $0x620] sm:$0xff] }
 0x2c0   :  { %2301 = vmatprep.subr.bf16.mxu0 %v2300_v21  ;;  %v995_v21 = vld [vmem:[%s3729_s5 + $0x6b0] sm:$0xff]  ;;  %v2322_v28 = vpack.c.bf16 %v978_v19, %v977_v8  ;;  %v1017_v7 = vld [vmem:[%s3729_s5 + $0x760] sm:$0xff] }
 0x2c1   :  { %2271 = vmatpush3.bf16.msra.mxu1 %v2270_v25  ;;  %v1010_v25 = vld [vmem:[%s3729_s5 + $0x728] sm:$0xff]  ;;  %v987_v19 = vld [vmem:[%s3729_s5 + $0x670] sm:$0xff] }
 0x2c2   :  { %2273 = vmatprep.subr.bf16.mxu1 %v2272_v30  ;;  %v1028_v30 = vld [vmem:[%s3729_s5 + $0x7b8] sm:$0xff]  ;;  %v2354_v34 = vpack.c.bf16 %v1010_v25, %v1009_v23 }
 0x2c3   :  { %2303 = vmatpush3.bf16.msra.mxu0 %v2302_v3  ;;  %v980_v3 = vld [vmem:[%s3729_s5 + $0x638] sm:$0xff]  ;;  %v2356_v38 = vpack.c.bf16 %v1028_v30, %v1027_v29 }
 0x2c4   :  { %2305 = vmatprep.subr.bf16.mxu0 %v2304_v37  ;;  %v998_v37 = vld [vmem:[%s3729_s5 + $0x6c8] sm:$0xff]  ;;  %v2326_v26 = vpack.c.bf16 %v980_v3, %v979_v33  ;;  %v1020_v23 = vld [vmem:[%s3729_s5 + $0x778] sm:$0xff] }
 0x2c5   :  { %2275 = vmatpush3.bf16.msra.mxu1 %v2274_v17  ;;  %v1012_v17 = vld [vmem:[%s3729_s5 + $0x738] sm:$0xff]  ;;  %v2328_v45 = vpack.c.bf16 %v998_v37, %v997_v35 }
 0x2c6   :  { %2277 = vmatprep.subr.bf16.mxu1 %v2276_v46  ;;  %v1030_v46 = vld [vmem:[%s3729_s5 + $0x7c8] sm:$0xff]  ;;  %v2358_v50 = vpack.c.bf16 %v1012_v17, %v1011_v40 }
 0x2c7   :  { %2307 = vmatpush3.bf16.msra.mxu0 %v2306_v49  ;;  %v982_v49 = vld [vmem:[%s3729_s5 + $0x648] sm:$0xff]  ;;  %v2360_v53 = vpack.c.bf16 %v1030_v46, %v1029_v27 }
 0x2c8   :  { %2309 = vmatprep.subr.bf16.mxu0 %v2308_v52  ;;  %v1000_v52 = vld [vmem:[%s3729_s5 + $0x6d8] sm:$0xff]  ;;  %v2330_v55 = vpack.c.bf16 %v982_v49, %v981_v48 }
 0x2c9   :  { %2279 = vmatpush3.bf16.msra.mxu1 %v2278_v39  ;;  %v1014_v39 = vld [vmem:[%s3729_s5 + $0x748] sm:$0xff]  ;;  %v2332_v59 = vpack.c.bf16 %v1000_v52, %v999_v51 }
 0x2ca   :  { %2313 = vmatprep.subr.bf16.mxu1 %v2312_v58  ;;  %v1032_v58 = vld [vmem:[%s3729_s5 + $0x7d8] sm:$0xff]  ;;  %v2362_v32 = vpack.c.bf16 %v1014_v39, %v1013_v54 }
 0x2cb   :  { %2311 = vmatpush3.bf16.msra.mxu0 %v2310_v43  ;;  %v984_v43 = vld [vmem:[%s3729_s5 + $0x658] sm:$0xff]  ;;  %v2364_v0 = vpack.c.bf16 %v1032_v58, %v1031_v56 }
 0x2cc   :  { %1477 = vmatmul.mubr.f32.vlgmr.msra.gmra.mrb[8].mxu1 %v3372_v62  ;;  %2345 = vmatprep.subr.bf16.mxu0 %v2344_v63  ;;  %v1026_v62 = vld [vmem:[%s3729_s5 + $0x7a8] sm:$0xff]  ;;  %v2334_v2 = vpack.c.bf16 %v984_v43, %v983_v60 }
 0x2cd   :  { %2315 = vmatpush3.bf16.msra.mxu1 %v2314_v1  ;;  %v2352_v22 = vpack.c.bf16 %v1026_v62, %v1025_v14  ;;  %v1002_v63 = vld [vmem:[%s3729_s5 + $0x6e8] sm:$0xff]  ;;  %v1016_v1 = vld [vmem:[%s3729_s5 + $0x758] sm:$0xff]  ;;  %v1035_v62 = vld [vmem:[%s3729_s5 + $0x7f0] sm:$0xff] }
 0x2ce   :  { %1547 = vmatmul.mubr.f32.vlgmr.msra.gmra.mrb[8].mxu0 %v3389_v41  ;;  %2317 = vmatprep.subr.bf16.mxu1 %v2316_v5  ;;  %v996_v41 = vld [vmem:[%s3729_s5 + $0x6b8] sm:$0xff]  ;;  %v1034_v5 = vld [vmem:[%s3729_s5 + $0x7e8] sm:$0xff]  ;;  %v2336_v6 = vpack.c.bf16 %v1002_v63, %v1001_v61  ;;  %v2366_v11 = vpack.c.bf16 %v1016_v1, %v1015_v15 }
 0x2cf   :  { %2347 = vmatpush3.bf16.msra.mxu0 %v2346_v10  ;;  %v2324_v31 = vpack.c.bf16 %v996_v41, %v995_v21  ;;  %v986_v10 = vld [vmem:[%s3729_s5 + $0x668] sm:$0xff]  ;;  %v2368_v44 = vpack.c.bf16 %v1034_v5, %v1033_v4 }
 0x2d0   :  { %2349 = vmatprep.subr.bf16.mxu0 %v2348_v47  ;;  %v1004_v47 = vld [vmem:[%s3729_s5 + $0x6f8] sm:$0xff]  ;;  %v2338_v14 = vpack.c.bf16 %v986_v10, %v985_v9 }
 0x2d1   :  { %2319 = vmatpush3.bf16.msra.mxu1 %v2318_v13  ;;  %v1018_v13 = vld [vmem:[%s3729_s5 + $0x768] sm:$0xff]  ;;  %v2340_v8 = vpack.c.bf16 %v1004_v47, %v1003_v12 }
 0x2d2   :  { %2321 = vmatprep.subr.bf16.mxu1 %v2320_v18  ;;  %v1036_v18 = vld [vmem:[%s3729_s5 + $0x7f8] sm:$0xff]  ;;  %v2370_v21 = vpack.c.bf16 %v1018_v13, %v1017_v7 }
 0x2d3   :  { %2351 = vmatpush3.bf16.msra.mxu0 %v2350_v20  ;;  %v988_v20 = vld [vmem:[%s3729_s5 + $0x678] sm:$0xff]  ;;  %v2372_v41 = vpack.c.bf16 %v1036_v18, %v1035_v62 }
 0x2d4   :  { %2353 = vmatprep.subr.bf16.mxu0 %v2352_v22  ;;  %v1019_v22 = vld [vmem:[%s3729_s5 + $0x770] sm:$0xff]  ;;  %v2342_v25 = vpack.c.bf16 %v988_v20, %v987_v19 }
 0x2d5   :  { %2323 = vmatpush3.bf16.msra.mxu1 %v2322_v28  ;;  %v2374_v28 = vpack.c.bf16 %v1020_v23, %v1019_v22 }
 0x2d6   :  { %2325 = vmatprep.subr.bf16.mxu1 %v2324_v31 }
 0x2d7   :  { %2355 = vmatpush3.bf16.msra.mxu0 %v2354_v34 }
 0x2d8   :  { %2357 = vmatprep.subr.bf16.mxu0 %v2356_v38 }
 0x2d9   :  { %2327 = vmatpush3.bf16.msra.mxu1 %v2326_v26  ;;  %v1775_v26 = vld [vmem:[%s3730_s6] ss:$0 sm:$0xff]  ;;  %s2491_s6 = smov [#allocation5]  }
 0x2da   :  { %2329 = vmatprep.subr.bf16.mxu1 %v2328_v45  ;;  %s1726_s1 = sshll.u32 %s2491_s6, 4  ;;  %s1727_s1 = int_to_ptr.vmem [resolvable:$true] %s1726_s1 }
 0x2db   :  { %2359 = vmatpush3.bf16.msra.mxu0 %v2358_v50  ;;  %s2414_s22 = scalar_lea.vmem %s1727_s1, 32  ;;  %p2419_p1 = scmp.lt.s32.totalorder %s1727_s1, %s1727_s1 }
 0x2dc   :  { %2361 = vmatprep.subr.bf16.mxu0 %v2360_v53  ;;  %p2415_p0 = scmp.ne.s32.totalorder %s1727_s1, %s2414_s22  ;;  %p2420_p2 = scmp.lt.s32.totalorder %s2414_s22, %s2414_s22 }
 0x2dd   :  { %2331 = vmatpush3.bf16.msra.mxu1 %v2330_v55 }
 0x2de   :  { %2333 = vmatprep.subr.bf16.mxu1 %v2332_v59  ;;  %p2421_p3 = por %p2420_p2, %p2419_p1 }
 0x2df   :  { %2363 = vmatpush3.bf16.msra.mxu0 %v2362_v32 }
 0x2e0   :  { %2365 = vmatprep.subr.bf16.mxu0 %v2364_v0  ;;  %p2422_p4 = pnand %p2421_p3, %p2415_p0 }
 0x2e1   :  { %2335 = vmatpush3.bf16.msra.mxu1 %v2334_v2 }
 0x2e2   :  { %2337 = vmatprep.subr.bf16.mxu1 %v2336_v6 }
 0x2e3   :  { %2367 = vmatpush3.bf16.msra.mxu0 %v2366_v11 }
 0x2e4   :  { %2369 = vmatprep.subr.bf16.mxu0 %v2368_v44 }
 0x2e5   :  { %2339 = vmatpush3.bf16.msra.mxu1 %v2338_v14 }
 0x2e6   :  { %2341 = vmatprep.subr.bf16.mxu1 %v2340_v8 }
 0x2e7   :  { %2371 = vmatpush3.bf16.msra.mxu0 %v2370_v21 }
 0x2e8   :  { %2373 = vmatprep.subr.bf16.mxu0 %v2372_v41 }
 0x2e9   :  { %2343 = vmatpush3.bf16.msra.mxu1 %v2342_v25 }
 0x2eb   :  { %2375 = vmatpush3.bf16.msra.mxu0 %v2374_v28 }
 0x306   :  { %v754_v29 = vpop.permute.xlu0 %753 }
 0x307   :  { %756 = vst.msk [vmem:[#allocation2 + $0x19] sm:$0x1] %vm483_vm5, %v754_v29 }
 0x308   :  { %758 = vst.msk [vmem:[#allocation2 + $0x19] sm:$0x1] %vm498_vm6, %v3172_v16  ;;  %v760_v30 = vpop.permute.xlu1 %759 }
 0x309   :  { %762 = vst.msk [vmem:[#allocation2 + $0x1b] sm:$0x1] %vm483_vm5, %v760_v30 }
 0x30a   :  { %764 = vst.msk [vmem:[#allocation2 + $0x1b] sm:$0x1] %vm498_vm6, %v3190_v24  ;;  %v766_v31 = vpop.permute.xlu0 %765 }
 0x30b   :  { %768 = vst.msk [vmem:[#allocation2 + $0x1d] sm:$0x1] %vm483_vm5, %v766_v31 }
 0x30c   :  { %770 = vst.msk [vmem:[#allocation2 + $0x1d] sm:$0x1] %vm498_vm6, %v3208_v36  ;;  %v772_v33 = vpop.permute.xlu1 %771 }
 0x30d   :  { %774 = vst.msk [vmem:[#allocation2 + $0x1f] sm:$0x1] %vm483_vm5, %v772_v33 }
 0x30e   :  { %776 = vst.msk [vmem:[#allocation2 + $0x1f] sm:$0x1] %vm498_vm6, %v3225_v42  ;;  %v644_v3 = vpop.permute.xlu0 %643 }
 0x30f   :  { %646 = vst.msk [vmem:[#allocation2 + $0x18] sm:$0x1] %vm498_vm6, %v644_v3 }
 0x310   :  { %v653_v16 = vpop.permute.xlu1 %652 }
 0x311   :  { %655 = vst.msk [vmem:[#allocation2 + $0x1a] sm:$0x1] %vm498_vm6, %v653_v16 }
 0x312   :  { %v669_v34 = vpop.permute.xlu0 %668 }
 0x313   :  { %671 = vst.msk [vmem:[#allocation2 + $0x1c] sm:$0x1] %vm498_vm6, %v669_v34 }
 0x314   :  { %v678_v24 = vpop.permute.xlu1 %677 }
 0x315   :  { %680 = vst.msk [vmem:[#allocation2 + $0x1e] sm:$0x1] %vm498_vm6, %v678_v24 }
 0x31c   :  { %v780_v35 = vld [vmem:[#allocation2 + $0x18] sm:$0xff] }
 0x31d   :  { %v1106_v36 = vrot.slane %v780_v35, %v2729_v57  ;;  %v1099_v37 = vcombine.high %v780_v35, %v780_v35 }
 0x31f   :  { %v1114_v38 = vcombine.high %v1106_v36, %v1106_v36  ;;  %v1113_v40 = vrot.slane %v1099_v37, %v2729_v57 }
 0x321   :  { %1616 = vmatprep.mubr.f32.mxu1 %v1114_v38  ;;  %v1115_v42 = vcombine.high %v1113_v40, %v1113_v40 }
 0x322   :  { %1617 = vmatmul.mubr.f32.vlgmr.msra.gmra.mrb[10].mxu1 %v1106_v36 }
 0x323   :  { %1686 = vmatprep.mubr.f32.mxu0 %v1115_v42 }
 0x324   :  { %1687 = vmatmul.mubr.f32.vlgmr.msra.gmra.mrb[10].mxu0 %v1113_v40 }
 0x35f   :  { %v1826_v17 = vpop.f32.mrb[4].mxu1 }
 0x360   :  { %v1827_v27 = vpop.f32.mrb[5].mxu1 }
 0x361   :  { %v1828_v46 = vadd.f32 %v1827_v27, %v1826_v17  ;;  %v1861_v45 = vpop.f32.mrb[4].mxu0 }
 0x362   :  { %v1862_v48 = vpop.f32.mrb[5].mxu0 }
 0x363   :  { %v1199_v49 = vadd.f32 %v1828_v46, %v1775_v26  ;;  %v1863_v50 = vadd.f32 %v1862_v48, %v1861_v45 }
 0x365   :  { %v1269_v51 = vadd.f32 %v1863_v50, %v1199_v49 }
 0x37f   :  { %v1896_v52 = vpop.f32.mrb[6].mxu1 }
 0x380   :  { %v1897_v53 = vpop.f32.mrb[7].mxu1 }
 0x381   :  { %v1898_v57 = vadd.f32 %v1897_v53, %v1896_v52  ;;  %v1931_v54 = vpop.f32.mrb[6].mxu0 }
 0x382   :  { %v1932_v39 = vpop.f32.mrb[7].mxu0 }
 0x383   :  { %v1339_v55 = vadd.f32 %v1898_v57, %v1269_v51  ;;  %v1933_v56 = vadd.f32 %v1932_v39, %v1931_v54 }
 0x385   :  { %v1409_v58 = vadd.f32 %v1933_v56, %v1339_v55 }
 0x39f   :  { %v1966_v59 = vpop.f32.mrb[8].mxu1 }
 0x3a0   :  { %v1967_v60 = vpop.f32.mrb[9].mxu1 }
 0x3a1   :  { %v1968_v43 = vadd.f32 %v1967_v60, %v1966_v59  ;;  %v2001_v32 = vpop.f32.mrb[8].mxu0 }
 0x3a2   :  { %v2002_v61 = vpop.f32.mrb[9].mxu0 }
 0x3a3   :  { %v1479_v63 = vadd.f32 %v1968_v43, %v1409_v58  ;;  %v2003_v0 = vadd.f32 %v2002_v61, %v2001_v32 }
 0x3a5   :  { %v1549_v15 = vadd.f32 %v2003_v0, %v1479_v63 }
 0x3f5   :  { %v2036_v1 = vpop.f32.mrb[10].mxu1 }
 0x3f6   :  { %v2037_v2 = vpop.f32.mrb[11].mxu1 }
 0x3f7   :  { %v2038_v4 = vadd.f32 %v2037_v2, %v2036_v1  ;;  %v2071_v5 = vpop.f32.mrb[10].mxu0 }
 0x3f8   :  { %v2072_v6 = vpop.f32.mrb[11].mxu0 }
 0x3f9   :  { %v1619_v9 = vadd.f32 %v2038_v4, %v1549_v15  ;;  %v2073_v10 = vadd.f32 %v2072_v6, %v2071_v5 }
 0x3fb   :  { %v1689_v11 = vadd.f32 %v2073_v10, %v1619_v9 }
 0x3fd   :  { %v1700_v12 = vmul.f32 0.5, %v1689_v11  ;;  %1695 = vrot.lane.b32.xlu1 %v1689_v11, %s2490_s13  ;;  %1693 = vst.msk [vmem:[#allocation5] sm:$0x3] %vm1692_vm7, %v1689_v11 }
 0x3ff   :  { %v1701_v47 = vmul.f32 1.442695, %v1700_v12 }
 0x401   :  { %2412 = vpow2.f32 %v1701_v47 }
 0x402   :  { %2425 = shalt.err (!%p2422_p4)
}
 0x403   :  { %s2426_s25 = scalar_lea.hbm %s3733_s9, 32 }
 0x404   :  { %p2427_p5 = scmp.ne.s32.totalorder %s3733_s9, %s2426_s25  ;;  %p2430_p6 = scmp.lt.u32.totalorder %s2426_s25, %s3733_s9 }
 0x406   :  { %p2432_p7 = pnand %p2430_p6, %p2427_p5 }
 0x408   :  { %2435 = shalt.err (!%p2432_p7)
}
 0x409   :  { %1729 = dma.vmem_to_hbm [thread:$0]  %s1727_s1, 32, %s3733_s9, [#allocation6]  }
 0x40a   :  { %s2492_s29 = smov [#allocation7]  }
 0x40b   :  { %v2413_v44 = vpop.eup %2412  ;;  %s1736_s30 = sshll.u32 %s2492_s29, 4  ;;  %s1737_s30 = int_to_ptr.vmem [resolvable:$true] %s1736_s30 }
 0x40c   :  { %1704 = vrot.lane.b32.xlu0 %v2413_v44, %s2490_s13  ;;  %s2436_s11 = scalar_lea.vmem %s1737_s30, 32  ;;  %p2441_p9 = scmp.lt.s32.totalorder %s1737_s30, %s1737_s30 }
 0x40d   :  { %p2437_p8 = scmp.ne.s32.totalorder %s1737_s30, %s2436_s11  ;;  %p2442_p10 = scmp.lt.s32.totalorder %s2436_s11, %s2436_s11 }
 0x40f   :  { %p2443_p11 = por %p2442_p10, %p2441_p9 }
 0x411   :  { %p2444_p12 = pnand %p2443_p11, %p2437_p8 }
 0x46f   :  { %v1696_v7 = vpop.permute.xlu1 %1695 }
 0x470   :  { %1698 = vst.msk [vmem:[#allocation7] sm:$0x3] %vm1692_vm7, %v1696_v7 }
 0x471   :  { %2447 = shalt.err (!%p2444_p12)
}
 0x472   :  { %s2448_s9 = scalar_lea.hbm %s3734_s10, 32 }
 0x473   :  { %p2449_p13 = scmp.ne.s32.totalorder %s3734_s10, %s2448_s9  ;;  %p2452_p0 = scmp.lt.u32.totalorder %s2448_s9, %s3734_s10 }
 0x475   :  { %p2454_p1 = pnand %p2452_p0, %p2449_p13 }
 0x477   :  { %2457 = shalt.err (!%p2454_p1)
}
 0x478   :  { %1739 = dma.vmem_to_hbm [thread:$0]  %s1737_s30, 32, %s3734_s10, [#allocation6]   ;;  %v1699_v13 = vld [vmem:[%s3731_s7] sm:$0x3] }
 0x479   :  { %s2493_s5 = smov [#allocation3]  }
 0x47a   :  { %s1716_s21 = sshll.u32 %s2493_s5, 4  ;;  %s1717_s21 = int_to_ptr.vmem [resolvable:$true] %s1716_s21 }
 0x47b   :  { %s2458_s6 = scalar_lea.vmem %s1717_s21, 32  ;;  %p2463_p3 = scmp.lt.s32.totalorder %s1717_s21, %s1717_s21 }
 0x47c   :  { %p2459_p2 = scmp.ne.s32.totalorder %s1717_s21, %s2458_s6  ;;  %p2464_p4 = scmp.lt.s32.totalorder %s2458_s6, %s2458_s6 }
 0x47e   :  { %v1705_v14 = vpop.permute.xlu0 %1704  ;;  %p2465_p5 = por %p2464_p4, %p2463_p3 }
 0x47f   :  { %v1707_v62 = vmul.f32 %v1705_v14, %v1699_v13 }
 0x480   :  { %p2466_p6 = pnand %p2465_p5, %p2459_p2 }
 0x481   :  { %v1708_v18 = vadd.f32 %v1707_v62, %v1689_v11 }
 0x483   :  { %1709 = vst.msk [vmem:[#allocation3] sm:$0x3] %vm1692_vm7, %v1708_v18 }
 0x484   :  { %2469 = shalt.err (!%p2466_p6)
}
 0x485   :  { %s2470_s22 = scalar_lea.hbm %s3732_s8, 32 }
 0x486   :  { %p2471_p7 = scmp.ne.s32.totalorder %s3732_s8, %s2470_s22  ;;  %p2474_p8 = scmp.lt.u32.totalorder %s2470_s22, %s3732_s8 }
 0x488   :  { %p2476_p9 = pnand %p2474_p8, %p2471_p7 }
 0x48a   :  { %2479 = shalt.err (!%p2476_p9)
}
 0x48b   :  { %1719 = dma.vmem_to_hbm [thread:$0]  %s1717_s21, 32, %s3732_s8, [#allocation4]  }
 0x48c   :  { %2480 = dma.done.wait [#allocation4], 32  }
 0x48d   :  { %2481 = vsyncadd [#allocation4], 4294967264 }
 0x48e   :  { %2482 = dma.done.wait [#allocation6], 64  }
 0x48f   :  { %2483 = vsyncadd [#allocation6], 4294967232 }
 0x490   :  { %1749 = vsyncpa [#allocation4], 1 }
 0x491   :  { %1750 = vsyncpa [#allocation6], 1 }

</bundles_post_ra>
